<compile_context>
chip_gen: v6e
topology: v6e:2x2x1
jax: 0.10.0
libtpu: 0.0.40
codegen_flags: <defaults>
</compile_context>

<pallas_src>
import math
from functools import partial

import jax
import jax.numpy as jnp
from jax.experimental import pallas as pl
from jax.experimental.pallas import tpu as pltpu


def _round_up(x, m):
    return -(-x // m) * m


def _pick_tiles(n_pad):
    tm = 256 if n_pad % 256 == 0 else 128
    for tk in (512, 256, 128):
        if n_pad % tk == 0:
            return tm, tk
    return tm, 128  # unreachable: n_pad is a multiple of 128


# ------------------------- phase 1: hidden = relu(...) ----------------------

def _phase1_kernel(adj_ref, x_ref, w1_ref, b1_ref, hid_ref, acc_ref):
    k = pl.program_id(1)

    @pl.when(k == 0)
    def _():
        acc_ref[...] = jnp.zeros_like(acc_ref)

    # support1 tile (tk, nhid) recomputed per row-tile; cost is nfeat/tm of the
    # dominant N^2*nhid matmul -> negligible, keeps full fusion.
    s1 = jnp.dot(x_ref[...], w1_ref[...], preferred_element_type=jnp.float32)
    acc_ref[...] += jnp.dot(adj_ref[...], s1.astype(jnp.bfloat16),
                            preferred_element_type=jnp.float32)

    @pl.when(k == pl.num_programs(1) - 1)
    def _():
        hid_ref[...] = jnp.maximum(acc_ref[...] + b1_ref[...],
                                   0.0).astype(hid_ref.dtype)


# --------------- phase 2: z = eps*exp(logstd)+mean ; log_softmax ------------

def _phase2_kernel(adj_ref, hid_ref, w2_ref, b2_ref, eps_ref, out_ref,
                   acc_ref, *, nclass):
    k = pl.program_id(1)

    @pl.when(k == 0)
    def _():
        acc_ref[...] = jnp.zeros_like(acc_ref)

    # (adj @ hidden) first: dominant matmul output width = nhid (< 2*nclass).
    acc_ref[...] += jnp.dot(adj_ref[...], hid_ref[...],
                            preferred_element_type=jnp.float32)

    @pl.when(k == pl.num_programs(1) - 1)
    def _():
        ncp = out_ref.shape[1]                       # 128-padded class width
        diff = acc_ref[...].astype(jnp.bfloat16)     # (tm, nhid)
        pre = jnp.dot(diff, w2_ref[...],
                      preferred_element_type=jnp.float32) + b2_ref[...]
        mean = pre[:, :ncp]                          # lane-aligned slices
        logstd = pre[:, ncp:]

        z = eps_ref[...] * jnp.exp(logstd) + mean    # (tm, ncp) f32

        # log-softmax over the REAL class columns only, via lane mask.
        col = jax.lax.broadcasted_iota(jnp.int32, z.shape, 1)
        valid = col < nclass
        z = jnp.where(valid, z, -jnp.inf)
        m = jnp.max(z, axis=1, keepdims=True)
        zs = z - m
        p = jnp.where(valid, jnp.exp(zs), 0.0)
        lse = jnp.log(jnp.sum(p, axis=1, keepdims=True))
        out_ref[...] = zs - lse                      # full-width unmasked vst


# ------------------------------ jitted wrapper ------------------------------

@partial(jax.jit, static_argnames=("nclass",))
def vgcn2_forward(x, adj, eps, w1, b1, w2pad, b2pad, *, nclass):
    n, nfeat = x.shape
    nhid = w1.shape[1]
    ncls_pad = w2pad.shape[1] // 2
    n_pad = _round_up(n, 128)
    tm, tk = _pick_tiles(n_pad)
    grid = (n_pad // tm, n_pad // tk)

    # bf16 + zero-pad the N^2 operand and node-dim inputs once, outside the
    # kernels (zero adj rows/cols keep real rows exact; padded rows sliced off).
    x_p = jnp.pad(x.astype(jnp.bfloat16), ((0, n_pad - n), (0, 0)))
    adj_p = jnp.pad(adj.astype(jnp.bfloat16),
                    ((0, n_pad - n), (0, n_pad - n)))
    eps_p = jnp.pad(eps.astype(jnp.float32),
                    ((0, n_pad - n), (0, ncls_pad - eps.shape[1])))

    cparams = pltpu.CompilerParams(
        dimension_semantics=("parallel", "arbitrary"))

    # ---- phase 1: hidden = relu(adj @ (x @ W1) + b1) ----
    hidden = pl.pallas_call(
        _phase1_kernel,
        out_shape=jax.ShapeDtypeStruct((n_pad, nhid), jnp.bfloat16),
        grid=grid,
        in_specs=[
            pl.BlockSpec((tm, tk), lambda i, k: (i, k)),         # adj tile
            pl.BlockSpec((tk, nfeat), lambda i, k: (k, 0)),      # x tile
            pl.BlockSpec((nfeat, nhid), lambda i, k: (0, 0)),    # W1 resident
            pl.BlockSpec((1, nhid), lambda i, k: (0, 0)),        # b1 resident
        ],
        out_specs=pl.BlockSpec((tm, nhid), lambda i, k: (i, 0)),
        scratch_shapes=[pltpu.VMEM((tm, nhid), jnp.float32)],
        compiler_params=cparams,
        cost_estimate=pl.CostEstimate(
            flops=2 * (n_pad * n_pad * nhid + grid[0] * n_pad * nfeat * nhid),
            transcendentals=0,
            bytes_accessed=2 * n_pad * n_pad + 2 * n_pad * (nfeat + nhid)),
    )(adj_p, x_p, w1, b1)

    # ---- phase 2: out = log_softmax(eps * exp(logstd) + mean) ----
    out_pad = pl.pallas_call(
        partial(_phase2_kernel, nclass=nclass),
        out_shape=jax.ShapeDtypeStruct((n_pad, ncls_pad), jnp.float32),
        grid=grid,
        in_specs=[
            pl.BlockSpec((tm, tk), lambda i, k: (i, k)),              # adj
            pl.BlockSpec((tk, nhid), lambda i, k: (k, 0)),            # hidden
            pl.BlockSpec((nhid, 2 * ncls_pad), lambda i, k: (0, 0)),  # W2cat
            pl.BlockSpec((1, 2 * ncls_pad), lambda i, k: (0, 0)),     # b2cat
            pl.BlockSpec((tm, ncls_pad), lambda i, k: (i, 0)),        # eps
        ],
        out_specs=pl.BlockSpec((tm, ncls_pad), lambda i, k: (i, 0)),
        scratch_shapes=[pltpu.VMEM((tm, nhid), jnp.float32)],
        compiler_params=cparams,
        cost_estimate=pl.CostEstimate(
            flops=2 * (n_pad * n_pad * nhid + n_pad * nhid * 2 * ncls_pad),
            transcendentals=n_pad * (2 * nclass + 1),
            bytes_accessed=2 * n_pad * n_pad + 2 * n_pad * nhid
                           + 8 * n_pad * ncls_pad),
    )(adj_p, hidden, w2pad, b2pad, eps_p)

    return out_pad[:n, :nclass]


# --------------------------- parameter initialization -----------------------

def _init_gc_params(key, in_features, out_features):
    # GraphConvolution.reset_parameters(): uniform(-stdv, stdv), stdv=1/sqrt(out)
    stdv = 1.0 / math.sqrt(out_features)
    kw, kb = jax.random.split(key)
    w = jax.random.uniform(kw, (in_features, out_features),
                           minval=-stdv, maxval=stdv, dtype=jnp.float32)
    b = jax.random.uniform(kb, (1, out_features),
                           minval=-stdv, maxval=stdv, dtype=jnp.float32)
    return w, b


class VGCN2Pallas:
    def __init__(self, key, nfeat, nhid, ncode, nclass, dropout):
        k1, k11, k12 = jax.random.split(key, 3)
        self.w1_f32, self.b1 = _init_gc_params(k1, nfeat, nhid)
        self.w11_f32, self.b11 = _init_gc_params(k11, nhid, nclass)
        self.w12_f32, self.b12 = _init_gc_params(k12, nhid, nclass)
        self.nclass = nclass
        self.dropout = dropout  # stored but never applied in reference forward

        ncls_pad = _round_up(nclass, 128)
        # bf16 MXU weights pre-cast at init; fc11/fc12 packed into one padded
        # RHS [W11 | 0 | W12 | 0] so mean/logstd are lane-aligned in the kernel.
        self.w1 = self.w1_f32.astype(jnp.bfloat16)
        w2 = jnp.zeros((nhid, 2 * ncls_pad), jnp.float32)
        w2 = w2.at[:, :nclass].set(self.w11_f32)
        w2 = w2.at[:, ncls_pad:ncls_pad + nclass].set(self.w12_f32)
        self.w2pad = w2.astype(jnp.bfloat16)
        b2 = jnp.zeros((1, 2 * ncls_pad), jnp.float32)
        b2 = b2.at[:, :nclass].set(self.b11)
        b2 = b2.at[:, ncls_pad:ncls_pad + nclass].set(self.b12)
        self.b2pad = b2

    def __call__(self, x, adj, eps):
        return vgcn2_forward(x, adj, eps, self.w1, self.b1,
                             self.w2pad, self.b2pad, nclass=self.nclass)


# ----------------------------------- main -----------------------------------

if __name__ == "__main__":
    N_NODES, NFEAT, NHID, NCODE, NCLASS = 300, 16, 8, 8, 8

    key = jax.random.PRNGKey(0)
    k_model, k_x, k_adj, k_eps = jax.random.split(key, 4)

    model = VGCN2Pallas(k_model, NFEAT, NHID, NCODE, NCLASS, dropout=0.5)

    x = jax.random.normal(k_x, (N_NODES, NFEAT), dtype=jnp.float32)

    # row-normalized adjacency with self loops
    raw = (jax.random.uniform(k_adj, (N_NODES, N_NODES)) > 0.9).astype(jnp.float32)
    raw = raw + jnp.eye(N_NODES, dtype=jnp.float32)
    adj = raw / jnp.sum(raw, axis=1, keepdims=True)

    # reparameterization noise (torch.randn equivalent), deterministic here
    eps = jax.random.normal(k_eps, (N_NODES, NCLASS), dtype=jnp.float32)

    out = jax.block_until_ready(model(x, adj, eps))

    assert out.shape == (N_NODES, NCLASS), out.shape
    assert bool(jnp.all(jnp.isfinite(out)))
    row_sums = jnp.sum(jnp.exp(out), axis=1)
    assert bool(jnp.allclose(row_sums, 1.0, atol=1e-4)), row_sums

    # pure-f32 JAX reference (kernel uses bf16 MXU operands -> relaxed tol)
    hidden_ref = jnp.maximum(adj @ (x @ model.w1_f32) + model.b1, 0.0)
    mean_ref = adj @ (hidden_ref @ model.w11_f32) + model.b11
    logstd_ref = adj @ (hidden_ref @ model.w12_f32) + model.b12
    z_ref = eps * jnp.exp(logstd_ref) + mean_ref
    ref = jax.nn.log_softmax(z_ref, axis=1)
    max_err = float(jnp.max(jnp.abs(out - ref)))
    assert max_err < 0.25, max_err

    print("KERNEL_OK")
</pallas_src>

<mosaic_0001>
module attributes {stable_mosaic.version = 11 : i64} {
  func.func @_phase1_kernel(%arg0: i32, %arg1: i32, %arg2: memref<128x128xbf16, #tpu.memory_space<vmem>>, %arg3: memref<128x16xbf16, #tpu.memory_space<vmem>>, %arg4: memref<16x8xbf16, #tpu.memory_space<vmem>>, %arg5: memref<1x8xf32, #tpu.memory_space<vmem>>, %arg6: memref<128x8xbf16, #tpu.memory_space<vmem>>, %arg7: memref<128x8xf32, #tpu.memory_space<vmem>>) attributes {dimension_semantics = [#tpu.dimension_semantics<parallel>, #tpu.dimension_semantics<arbitrary>], iteration_bounds = array<i64: 3, 3>, scalar_prefetch = 0 : i64, scratch_operands = 1 : i64, tpu.core_type = #tpu.core_type<tc>, window_params = [{transform_indices = @transform_0, window_bounds = array<i64: 128, 128>}, {transform_indices = @transform_1, window_bounds = array<i64: 128, 16>}, {pipeline_mode = #tpu.pipeline_mode<synchronous>, transform_indices = @transform_2, window_bounds = array<i64: 16, 8>}, {pipeline_mode = #tpu.pipeline_mode<synchronous>, transform_indices = @transform_3, window_bounds = array<i64: 1, 8>}, {transform_indices = @transform_4, window_bounds = array<i64: 128, 8>}]} {
    %c0_i32 = arith.constant 0 : i32
    %0 = arith.cmpi eq, %arg1, %c0_i32 : i32
    %1 = arith.extui %0 : i1 to i32
    %c0_i32_0 = arith.constant 0 : i32
    %2 = arith.cmpi ne, %1, %c0_i32_0 : i32
    scf.if %2 {
      %cst_12 = arith.constant 0.000000e+00 : f32
      %15 = vector.broadcast %cst_12 : f32 to vector<128x8xf32>
      %c0_13 = arith.constant 0 : index
      %c0_14 = arith.constant 0 : index
      %16 = vector.load %arg7[%c0_13, %c0_14] : memref<128x8xf32, #tpu.memory_space<vmem>>, vector<128x8xf32>
      tpu.vector_store %arg7[%c0_13, %c0_14], %15 {strides = array<i32>} : memref<128x8xf32, #tpu.memory_space<vmem>>, vector<128x8xf32>,
    } else {
    }
    %c0 = arith.constant 0 : index
    %c0_1 = arith.constant 0 : index
    %3 = vector.load %arg3[%c0, %c0_1] : memref<128x16xbf16, #tpu.memory_space<vmem>>, vector<128x16xbf16>
    %c0_2 = arith.constant 0 : index
    %c0_3 = arith.constant 0 : index
    %4 = vector.load %arg4[%c0_2, %c0_3] : memref<16x8xbf16, #tpu.memory_space<vmem>>, vector<16x8xbf16>
    %cst = arith.constant dense<0.000000e+00> : vector<128x8xf32>
    %5 = tpu.matmul %3, %4, %cst {dimension_numbers = #tpu.dot_dimension_numbers<[1], [0], [0], [1], [0, 0, 1, 1], [], []>} : vector<128x16xbf16>, vector<16x8xbf16>, vector<128x8xf32> -> vector<128x8xf32>
    %c0_4 = arith.constant 0 : index
    %c0_5 = arith.constant 0 : index
    %6 = vector.load %arg7[%c0_4, %c0_5] : memref<128x8xf32, #tpu.memory_space<vmem>>, vector<128x8xf32>
    %c0_6 = arith.constant 0 : index
    %c0_7 = arith.constant 0 : index
    %7 = vector.load %arg2[%c0_6, %c0_7] : memref<128x128xbf16, #tpu.memory_space<vmem>>, vector<128x128xbf16>
    %8 = arith.truncf %5 : vector<128x8xf32> to vector<128x8xbf16>
    %cst_8 = arith.constant dense<0.000000e+00> : vector<128x8xf32>
    %9 = tpu.matmul %7, %8, %cst_8 {dimension_numbers = #tpu.dot_dimension_numbers<[1], [0], [0], [1], [0, 0, 1, 1], [], []>} : vector<128x128xbf16>, vector<128x8xbf16>, vector<128x8xf32> -> vector<128x8xf32>
    %10 = arith.addf %6, %9 : vector<128x8xf32>
    %c0_9 = arith.constant 0 : index
    %c0_10 = arith.constant 0 : index
    %11 = vector.load %arg7[%c0_9, %c0_10] : memref<128x8xf32, #tpu.memory_space<vmem>>, vector<128x8xf32>
    tpu.vector_store %arg7[%c0_9, %c0_10], %10 {strides = array<i32>} : memref<128x8xf32, #tpu.memory_space<vmem>>, vector<128x8xf32>,
    %c2_i32 = arith.constant 2 : i32
    %12 = arith.cmpi eq, %arg1, %c2_i32 : i32
    %13 = arith.extui %12 : i1 to i32
    %c0_i32_11 = arith.constant 0 : i32
    %14 = arith.cmpi ne, %13, %c0_i32_11 : i32
    scf.if %14 {
      %c0_12 = arith.constant 0 : index
      %c0_13 = arith.constant 0 : index
      %15 = vector.load %arg7[%c0_12, %c0_13] : memref<128x8xf32, #tpu.memory_space<vmem>>, vector<128x8xf32>
      %c0_14 = arith.constant 0 : index
      %c0_15 = arith.constant 0 : index
      %16 = vector.load %arg5[%c0_14, %c0_15] : memref<1x8xf32, #tpu.memory_space<vmem>>, vector<1x8xf32>
      %17 = vector.broadcast %16 : vector<1x8xf32> to vector<128x8xf32>
      %18 = arith.addf %15, %17 : vector<128x8xf32>
      %cst_16 = arith.constant 0.000000e+00 : f32
      %19 = vector.broadcast %cst_16 : f32 to vector<128x8xf32>
      %20 = arith.maximumf %18, %19 : vector<128x8xf32>
      %21 = arith.truncf %20 : vector<128x8xf32> to vector<128x8xbf16>
      %c0_17 = arith.constant 0 : index
      %c0_18 = arith.constant 0 : index
      %22 = vector.load %arg6[%c0_17, %c0_18] : memref<128x8xbf16, #tpu.memory_space<vmem>>, vector<128x8xbf16>
      tpu.vector_store %arg6[%c0_17, %c0_18], %21 {strides = array<i32>} : memref<128x8xbf16, #tpu.memory_space<vmem>>, vector<128x8xbf16>,
    } else {
    }
    return
  }
  func.func @transform_0(%arg0: i32, %arg1: i32) -> (i32, i32) {
    %c0_i32 = arith.constant 0 : i32
    return %arg0, %arg1 : i32, i32
  }
  func.func @transform_1(%arg0: i32, %arg1: i32) -> (i32, i32) {
    %c0_i32 = arith.constant 0 : i32
    %c0_i32_0 = arith.constant 0 : i32
    return %arg1, %c0_i32 : i32, i32
  }
  func.func @transform_2(%arg0: i32, %arg1: i32) -> (i32, i32) {
    %c0_i32 = arith.constant 0 : i32
    %c0_i32_0 = arith.constant 0 : i32
    %c0_i32_1 = arith.constant 0 : i32
    return %c0_i32, %c0_i32_0 : i32, i32
  }
  func.func @transform_3(%arg0: i32, %arg1: i32) -> (i32, i32) {
    %c0_i32 = arith.constant 0 : i32
    %c0_i32_0 = arith.constant 0 : i32
    %c0_i32_1 = arith.constant 0 : i32
    return %c0_i32, %c0_i32_0 : i32, i32
  }
  func.func @transform_4(%arg0: i32, %arg1: i32) -> (i32, i32) {
    %c0_i32 = arith.constant 0 : i32
    %c0_i32_0 = arith.constant 0 : i32
    return %arg0, %c0_i32 : i32, i32
  }
}

module attributes {stable_mosaic.version = 11 : i64} {
  func.func @_phase2_kernel(%arg0: i32, %arg1: i32, %arg2: memref<128x128xbf16, #tpu.memory_space<vmem>>, %arg3: memref<128x8xbf16, #tpu.memory_space<vmem>>, %arg4: memref<8x256xbf16, #tpu.memory_space<vmem>>, %arg5: memref<1x256xf32, #tpu.memory_space<vmem>>, %arg6: memref<128x128xf32, #tpu.memory_space<vmem>>, %arg7: memref<128x128xf32, #tpu.memory_space<vmem>>, %arg8: memref<128x8xf32, #tpu.memory_space<vmem>>) attributes {dimension_semantics = [#tpu.dimension_semantics<parallel>, #tpu.dimension_semantics<arbitrary>], iteration_bounds = array<i64: 3, 3>, scalar_prefetch = 0 : i64, scratch_operands = 1 : i64, tpu.core_type = #tpu.core_type<tc>, window_params = [{transform_indices = @transform_0, window_bounds = array<i64: 128, 128>}, {transform_indices = @transform_1, window_bounds = array<i64: 128, 8>}, {pipeline_mode = #tpu.pipeline_mode<synchronous>, transform_indices = @transform_2, window_bounds = array<i64: 8, 256>}, {pipeline_mode = #tpu.pipeline_mode<synchronous>, transform_indices = @transform_3, window_bounds = array<i64: 1, 256>}, {transform_indices = @transform_4, window_bounds = array<i64: 128, 128>}, {transform_indices = @transform_5, window_bounds = array<i64: 128, 128>}]} {
    %c0_i32 = arith.constant 0 : i32
    %0 = arith.cmpi eq, %arg1, %c0_i32 : i32
    %1 = arith.extui %0 : i1 to i32
    %c0_i32_0 = arith.constant 0 : i32
    %2 = arith.cmpi ne, %1, %c0_i32_0 : i32
    scf.if %2 {
      %cst_9 = arith.constant 0.000000e+00 : f32
      %12 = vector.broadcast %cst_9 : f32 to vector<128x8xf32>
      %c0_10 = arith.constant 0 : index
      %c0_11 = arith.constant 0 : index
      %13 = vector.load %arg8[%c0_10, %c0_11] : memref<128x8xf32, #tpu.memory_space<vmem>>, vector<128x8xf32>
      tpu.vector_store %arg8[%c0_10, %c0_11], %12 {strides = array<i32>} : memref<128x8xf32, #tpu.memory_space<vmem>>, vector<128x8xf32>,
    } else {
    }
    %c0 = arith.constant 0 : index
    %c0_1 = arith.constant 0 : index
    %3 = vector.load %arg8[%c0, %c0_1] : memref<128x8xf32, #tpu.memory_space<vmem>>, vector<128x8xf32>
    %c0_2 = arith.constant 0 : index
    %c0_3 = arith.constant 0 : index
    %4 = vector.load %arg2[%c0_2, %c0_3] : memref<128x128xbf16, #tpu.memory_space<vmem>>, vector<128x128xbf16>
    %c0_4 = arith.constant 0 : index
    %c0_5 = arith.constant 0 : index
    %5 = vector.load %arg3[%c0_4, %c0_5] : memref<128x8xbf16, #tpu.memory_space<vmem>>, vector<128x8xbf16>
    %cst = arith.constant dense<0.000000e+00> : vector<128x8xf32>
    %6 = tpu.matmul %4, %5, %cst {dimension_numbers = #tpu.dot_dimension_numbers<[1], [0], [0], [1], [0, 0, 1, 1], [], []>} : vector<128x128xbf16>, vector<128x8xbf16>, vector<128x8xf32> -> vector<128x8xf32>
    %7 = arith.addf %3, %6 : vector<128x8xf32>
    %c0_6 = arith.constant 0 : index
    %c0_7 = arith.constant 0 : index
    %8 = vector.load %arg8[%c0_6, %c0_7] : memref<128x8xf32, #tpu.memory_space<vmem>>, vector<128x8xf32>
    tpu.vector_store %arg8[%c0_6, %c0_7], %7 {strides = array<i32>} : memref<128x8xf32, #tpu.memory_space<vmem>>, vector<128x8xf32>,
    %c2_i32 = arith.constant 2 : i32
    %9 = arith.cmpi eq, %arg1, %c2_i32 : i32
    %10 = arith.extui %9 : i1 to i32
    %c0_i32_8 = arith.constant 0 : i32
    %11 = arith.cmpi ne, %10, %c0_i32_8 : i32
    scf.if %11 {
      %c0_9 = arith.constant 0 : index
      %c0_10 = arith.constant 0 : index
      %12 = vector.load %arg8[%c0_9, %c0_10] : memref<128x8xf32, #tpu.memory_space<vmem>>, vector<128x8xf32>
      %13 = arith.truncf %12 : vector<128x8xf32> to vector<128x8xbf16>
      %c0_11 = arith.constant 0 : index
      %c0_12 = arith.constant 0 : index
      %14 = vector.load %arg4[%c0_11, %c0_12] : memref<8x256xbf16, #tpu.memory_space<vmem>>, vector<8x256xbf16>
      %cst_13 = arith.constant dense<0.000000e+00> : vector<128x256xf32>
      %15 = tpu.matmul %13, %14, %cst_13 {dimension_numbers = #tpu.dot_dimension_numbers<[1], [0], [0], [1], [0, 0, 1, 1], [], []>} : vector<128x8xbf16>, vector<8x256xbf16>, vector<128x256xf32> -> vector<128x256xf32>
      %c0_14 = arith.constant 0 : index
      %c0_15 = arith.constant 0 : index
      %16 = vector.load %arg5[%c0_14, %c0_15] : memref<1x256xf32, #tpu.memory_space<vmem>>, vector<1x256xf32>
      %17 = vector.broadcast %16 : vector<1x256xf32> to vector<128x256xf32>
      %18 = arith.addf %15, %17 : vector<128x256xf32>
      %19 = vector.extract_strided_slice %18 {offsets = [0, 0], sizes = [128, 128], strides = [1, 1]} : vector<128x256xf32> to vector<128x128xf32>
      %20 = vector.extract_strided_slice %18 {offsets = [0, 128], sizes = [128, 128], strides = [1, 1]} : vector<128x256xf32> to vector<128x128xf32>
      %c0_16 = arith.constant 0 : index
      %c0_17 = arith.constant 0 : index
      %21 = vector.load %arg6[%c0_16, %c0_17] : memref<128x128xf32, #tpu.memory_space<vmem>>, vector<128x128xf32>
      %22 = math.exp %20 : vector<128x128xf32>
      %23 = arith.mulf %21, %22 : vector<128x128xf32>
      %24 = arith.addf %23, %19 : vector<128x128xf32>
      %25 = tpu.iota {dimensions = array<i32: 1>} : vector<128x128xi32>
      %c8_i32 = arith.constant 8 : i32
      %26 = vector.broadcast %c8_i32 : i32 to vector<128x128xi32>
      %27 = arith.cmpi slt, %25, %26 : vector<128x128xi32>
      %cst_18 = arith.constant 0xFF800000 : f32
      %28 = vector.broadcast %cst_18 : f32 to vector<128x128xf32>
      %29 = arith.select %27, %24, %28 : vector<128x128xi1>, vector<128x128xf32>
      %cst_19 = arith.constant dense<0xFF800000> : vector<128xf32>
      %30 = vector.multi_reduction <maximumf>, %29, %cst_19 [1] : vector<128x128xf32> to vector<128xf32>
      %31 = vector.shape_cast %30 : vector<128xf32> to vector<128x1xf32>
      %32 = vector.broadcast %31 : vector<128x1xf32> to vector<128x128xf32>
      %33 = arith.subf %29, %32 : vector<128x128xf32>
      %34 = math.exp %33 : vector<128x128xf32>
      %cst_20 = arith.constant 0.000000e+00 : f32
      %35 = vector.broadcast %cst_20 : f32 to vector<128x128xf32>
      %36 = arith.select %27, %34, %35 : vector<128x128xi1>, vector<128x128xf32>
      %cst_21 = arith.constant dense<0.000000e+00> : vector<128xf32>
      %37 = vector.multi_reduction <add>, %36, %cst_21 [1] : vector<128x128xf32> to vector<128xf32>
      %38 = vector.shape_cast %37 : vector<128xf32> to vector<128x1xf32>
      %39 = math.log %38 : vector<128x1xf32>
      %40 = vector.broadcast %39 : vector<128x1xf32> to vector<128x128xf32>
      %41 = arith.subf %33, %40 : vector<128x128xf32>
      %c0_22 = arith.constant 0 : index
      %c0_23 = arith.constant 0 : index
      %42 = vector.load %arg7[%c0_22, %c0_23] : memref<128x128xf32, #tpu.memory_space<vmem>>, vector<128x128xf32>
      tpu.vector_store %arg7[%c0_22, %c0_23], %41 {strides = array<i32>} : memref<128x128xf32, #tpu.memory_space<vmem>>, vector<128x128xf32>,
    } else {
    }
    return
  }
  func.func @transform_0(%arg0: i32, %arg1: i32) -> (i32, i32) {
    %c0_i32 = arith.constant 0 : i32
    return %arg0, %arg1 : i32, i32
  }
  func.func @transform_1(%arg0: i32, %arg1: i32) -> (i32, i32) {
    %c0_i32 = arith.constant 0 : i32
    %c0_i32_0 = arith.constant 0 : i32
    return %arg1, %c0_i32 : i32, i32
  }
  func.func @transform_2(%arg0: i32, %arg1: i32) -> (i32, i32) {
    %c0_i32 = arith.constant 0 : i32
    %c0_i32_0 = arith.constant 0 : i32
    %c0_i32_1 = arith.constant 0 : i32
    return %c0_i32, %c0_i32_0 : i32, i32
  }
  func.func @transform_3(%arg0: i32, %arg1: i32) -> (i32, i32) {
    %c0_i32 = arith.constant 0 : i32
    %c0_i32_0 = arith.constant 0 : i32
    %c0_i32_1 = arith.constant 0 : i32
    return %c0_i32, %c0_i32_0 : i32, i32
  }
  func.func @transform_4(%arg0: i32, %arg1: i32) -> (i32, i32) {
    %c0_i32 = arith.constant 0 : i32
    %c0_i32_0 = arith.constant 0 : i32
    return %arg0, %c0_i32 : i32, i32
  }
  func.func @transform_5(%arg0: i32, %arg1: i32) -> (i32, i32) {
    %c0_i32 = arith.constant 0 : i32
    %c0_i32_0 = arith.constant 0 : i32
    return %arg0, %c0_i32 : i32, i32
  }
}

</mosaic_0001>

<bundles_post_ra>
// kernel: vgcn2_forward.3
= control target key start
LH: loop header
LB: loop body
LE: loop exit
PB: predicated region body
PF: predicated region fallthrough
CT: control target
= control target key end

     0   :  { %s1642_s18 = smov 0   ;;  %s1644_s19 = smov 0   ;;  %s2132_s0 = inlined_call_operand.vmem [shape: bf16[384,384], index: 0, kind: input, shape index: {}]   ;;  %s2133_s1 = inlined_call_operand.vmem [shape: bf16[384,8], index: 1, kind: input, shape index: {}]   ;;  %s2134_s2 = inlined_call_operand.vmem [shape: bf16[8,256], index: 2, kind: input, shape index: {}]   ;;  %s2135_s3 = inlined_call_operand.vmem [shape: f32[1,256], index: 3, kind: input, shape index: {}]   ;;  %s2136_s4 = inlined_call_operand.vmem [shape: f32[384,128], index: 4, kind: input, shape index: {}]   ;;  %s2137_s5 = inlined_call_operand.vmem [shape: f32[384,128], index: 5, kind: output, shape index: {}]  }
   0x1   :  { %s1646_s20 = smov 0   ;;  %s1648_s21 = smov 0  }
   0x2   :  { %s1650_s22 = smov 0   ;;  %s1652_s23 = smov 0  }
   0x3   :  { %s1654_s24 = smov 0  }
   0x4 LB: > { %s24_s25 = sadd.s32 1, %s1600_s22  ;;  %s27_s26 = sadd.s32 1, %s1604_s23  ;;  %s1608_s24 = sphi %s1654_s24, %s15_s24   ;;  %s1604_s23 = sphi %s1652_s23, %s2143_s23   ;;  %s1600_s22 = sphi %s1650_s22, %s2142_s22   ;;  %s1596_s21 = sphi %s1648_s21, %s2141_s21   ;;  %s1592_s20 = sphi %s1646_s20, %s2140_s20   ;;  %s1588_s19 = sphi %s1644_s19, %s2139_s19   ;;  %s1584_s18 = sphi %s1642_s18, %s2138_s18  }
   0x5   : > { %p25_p0 = scmp.ge.s32.totalorder %s24_s25, 3  ;;  %p43_p1 = scmp.ne.s32.totalorder %s1588_s19, %s1584_s18 }
   0x6   : > { %p44_p2 = scmp.eq.s32.totalorder %s1608_s24, 0  ;;  %s36_s30 = sadd.s32 1, %s1588_s19 }
   0x7   : > { %s2145_s25 = smov (%p25_p0, %s24_s25), 0  ;;  %s2147_s26 = smov (!%p25_p0, %s27_s26), %s1604_s23 }
   0x8   : > { %p45_p3 = por %p44_p2, %p43_p1  ;;  %p29_p4 = scmp.ge.s32.totalorder %s2147_s26, 3 }
   0x9   : > { %s32_s27 = ssub.s32 %s1600_s22, %s2145_s25  ;;  %p1271_p6 = scmp.ge.s32.totalorder %s1608_s24, 9 }
   0xa   : > { %s2149_s26 = smov (%p29_p4, %s2147_s26), 0 }
   0xb   : > { %s31_s28 = ssub.s32 %s1604_s23, %s2149_s26  ;;  %195 = sbr.rel (%p1271_p6) target bundleno = 33 (0x21), region = 24 }
   0xc   : > { %s33_s29 = sor.u32 %s32_s27, %s31_s28 }
   0xd   : > { %p34_p5 = scmp.eq.s32.totalorder %s33_s29, 0 }
   0xf   : > { %s1693_s6 = scalar_select %p34_p5, %s1588_s19, %s36_s30  }
  0x10   : > { %198 = sbr.rel (!%p45_p3) target bundleno = 33 (0x21), region = 28  ;;  %s200_s7 = sand.u32 (%p45_p3), 1, %s1588_s19  }
  0x11   : > { %s1381_s8 = smul.u32 (%p45_p3), 48, %s1604_s23  ;;  %s1272_s9 = sshll.u32 (%p45_p3), %s200_s7, 6 }
  0x12   : > { %s202_s15 = scalar_lea.vmem (%p45_p3), [#allocation3], %s1272_s9 }
  0x13   : > { %s205_s10 = sadd.s32 (%p45_p3), %s1600_s22, %s1381_s8 }
  0x14   : > { %s1275_s11 = sshll.u32 (%p45_p3), %s205_s10, 2 }
  0x15   : > { %s1702_s14 = scalar_lea.vmem %s2132_s0, %s1275_s11 }
  0x16   : > { %v224_v0 = vld [vmem:[%s1702_s14] sm:$0xf]  ;;  %v226_v1 = vld [vmem:[%s1702_s14 + $0xc] sm:$0xf]  ;;  %v228_v2 = vld [vmem:[%s1702_s14 + $0x18] sm:$0xf] }
  0x17   : > { %225 = vst [vmem:[%s202_s15] sm:$0xf] %v224_v0  ;;  %227 = vst [vmem:[%s202_s15 + $0x4] sm:$0xf] %v226_v1  ;;  %v230_v3 = vld [vmem:[%s1702_s14 + $0x24] sm:$0xf] }
  0x18   : > { %229 = vst [vmem:[%s202_s15 + $0x8] sm:$0xf] %v228_v2  ;;  %v232_v4 = vld [vmem:[%s1702_s14 + $0x30] sm:$0xf]  ;;  %v234_v5 = vld [vmem:[%s1702_s14 + $0x3c] sm:$0xf] }
  0x19   : > { %231 = vst [vmem:[%s202_s15 + $0xc] sm:$0xf] %v230_v3  ;;  %233 = vst [vmem:[%s202_s15 + $0x10] sm:$0xf] %v232_v4  ;;  %v236_v6 = vld [vmem:[%s1702_s14 + $0x48] sm:$0xf] }
  0x1a   : > { %235 = vst [vmem:[%s202_s15 + $0x14] sm:$0xf] %v234_v5  ;;  %v238_v7 = vld [vmem:[%s1702_s14 + $0x54] sm:$0xf]  ;;  %v240_v8 = vld [vmem:[%s1702_s14 + $0x60] sm:$0xf] }
  0x1b   : > { %237 = vst [vmem:[%s202_s15 + $0x18] sm:$0xf] %v236_v6  ;;  %239 = vst [vmem:[%s202_s15 + $0x1c] sm:$0xf] %v238_v7  ;;  %v242_v9 = vld [vmem:[%s1702_s14 + $0x6c] sm:$0xf] }
  0x1c   : > { %241 = vst [vmem:[%s202_s15 + $0x20] sm:$0xf] %v240_v8  ;;  %v244_v10 = vld [vmem:[%s1702_s14 + $0x78] sm:$0xf]  ;;  %v246_v11 = vld [vmem:[%s1702_s14 + $0x84] sm:$0xf] }
  0x1d   : > { %243 = vst [vmem:[%s202_s15 + $0x24] sm:$0xf] %v242_v9  ;;  %245 = vst [vmem:[%s202_s15 + $0x28] sm:$0xf] %v244_v10  ;;  %v248_v12 = vld [vmem:[%s1702_s14 + $0x90] sm:$0xf] }
  0x1e   : > { %247 = vst [vmem:[%s202_s15 + $0x2c] sm:$0xf] %v246_v11  ;;  %v250_v13 = vld [vmem:[%s1702_s14 + $0x9c] sm:$0xf]  ;;  %v252_v14 = vld [vmem:[%s1702_s14 + $0xa8] sm:$0xf] }
  0x1f   : > { %249 = vst [vmem:[%s202_s15 + $0x30] sm:$0xf] %v248_v12  ;;  %251 = vst [vmem:[%s202_s15 + $0x34] sm:$0xf] %v250_v13  ;;  %v254_v15 = vld [vmem:[%s1702_s14 + $0xb4] sm:$0xf] }
  0x20   : > { %253 = vst [vmem:[%s202_s15 + $0x38] sm:$0xf] %v252_v14  ;;  %255 = vst [vmem:[%s202_s15 + $0x3c] sm:$0xf] %v254_v15 }
  0x21 PF: > { %p1276_p7 = scmp.ge.s32.totalorder %s1608_s24, 1  ;;  %p328_p8 = scmp.lt.s32.totalorder %s1608_s24, 10 }
  0x23   : > { %p329_p9 = pnand %p1276_p7, %p328_p8 }
  0x24   : > { %s335_s16 = sand.u32 (!%p329_p9), 1, %s1584_s18   ;;  %s1278_s17 = sshll.u32 (!%p329_p9), %s1592_s20, 4 }
  0x25   : > { %332 = sbr.rel (%p329_p9) target bundleno = 879 (0x36f), region = 77  ;;  %s1277_s27 = sshll.u32 (!%p329_p9), %s335_s16, 6 }
  0x26   : > { %p374_p10 = scmp.lt.s32.totalorder (!%p329_p9), %s1278_s17, 47  ;;  %s1280_s28 = sshll.u32 (!%p329_p9), %s1596_s21, 4 }
  0x27   : > { %p380_p11 = scmp.lt.s32.totalorder (!%p329_p9), %s1280_s28, 47  ;;  %s1740_s21 = scalar_lea.vmem (!%p329_p9), [#allocation3], %s1277_s27 }
  0x28   : > { %p1284_p12 = scmp.ne.s32.totalorder (!%p329_p9), %s1592_s20, 0 }
  0x2a   : > { %s2151_s17 = smov (!%p374_p10, %s1278_s17), 47  ;;  %s2153_s28 = smov (!%p380_p11, %s1280_s28), 47 }
  0x2b   : > { %s1279_s29 = sshll.u32 %s2151_s17, 2  ;;  %s1281_s9 = sshll.u32 %s2153_s28, 3 }
  0x2c   : > { %s1728_s8 = scalar_lea.vmem %s2133_s1, %s1279_s29  ;;  %s1733_s12 = scalar_lea.vmem %s2136_s4, %s1281_s9 }
  0x2d   : > { %s1738_s14 = scalar_lea.vmem %s2137_s5, %s1281_s9  ;;  %395 = sbr.rel (%p1284_p12) target bundleno = 59 (0x3b), region = 85 }
  0x32   : > { %vm396_vm0 = vcmask 64512   ;;  %v1610_v16 = vmov 0.0  }
  0x33   : > { %397 = vst.msk [vmem:[#allocation2] sm:$0xff] %vm396_vm0, %v1610_v16  ;;  %398 = vst.msk [vmem:[#allocation2 + $0x8] sm:$0xff] %vm396_vm0, %v1610_v16 }
  0x34   : > { %399 = vst.msk [vmem:[#allocation2 + $0x10] sm:$0xff] %vm396_vm0, %v1610_v16  ;;  %400 = vst.msk [vmem:[#allocation2 + $0x18] sm:$0xff] %vm396_vm0, %v1610_v16 }
  0x35   : > { %401 = vst.msk [vmem:[#allocation2 + $0x20] sm:$0xff] %vm396_vm0, %v1610_v16  ;;  %402 = vst.msk [vmem:[#allocation2 + $0x28] sm:$0xff] %vm396_vm0, %v1610_v16 }
  0x36   : > { %403 = vst.msk [vmem:[#allocation2 + $0x30] sm:$0xff] %vm396_vm0, %v1610_v16  ;;  %404 = vst.msk [vmem:[#allocation2 + $0x38] sm:$0xff] %vm396_vm0, %v1610_v16 }
  0x37   : > { %405 = vst.msk [vmem:[#allocation2 + $0x40] sm:$0xff] %vm396_vm0, %v1610_v16  ;;  %406 = vst.msk [vmem:[#allocation2 + $0x48] sm:$0xff] %vm396_vm0, %v1610_v16 }
  0x38   : > { %407 = vst.msk [vmem:[#allocation2 + $0x50] sm:$0xff] %vm396_vm0, %v1610_v16  ;;  %408 = vst.msk [vmem:[#allocation2 + $0x58] sm:$0xff] %vm396_vm0, %v1610_v16 }
  0x39   : > { %409 = vst.msk [vmem:[#allocation2 + $0x60] sm:$0xff] %vm396_vm0, %v1610_v16  ;;  %410 = vst.msk [vmem:[#allocation2 + $0x68] sm:$0xff] %vm396_vm0, %v1610_v16 }
  0x3a   : > { %411 = vst.msk [vmem:[#allocation2 + $0x70] sm:$0xff] %vm396_vm0, %v1610_v16  ;;  %412 = vst.msk [vmem:[#allocation2 + $0x78] sm:$0xff] %vm396_vm0, %v1610_v16 }
  0x3b PF: > { %v1440_v17 = vld [vmem:[%s1728_s8 + $0x38] sm:$0xff]   ;;  %v1441_v18 = vld [vmem:[%s1728_s8 + $0x30] sm:$0xff]   ;;  %v1442_v19 = vld [vmem:[%s1728_s8 + $0x28] sm:$0xff]   ;;  %vm670_vm1 = vcmask 64512   ;;  %p1301_p13 = scmp.ne.s32.totalorder %s1592_s20, 2 }
  0x3c   : > { %1331 = vmatprep.subr.bf16.mxu0 %v1440_v17  ;;  %1363 = vmatprep.subr.bf16.mxu1 %v1440_v17  ;;  %v1443_v20 = vld [vmem:[%s1728_s8 + $0x20] sm:$0xff]   ;;  %v1444_v23 = vld [vmem:[%s1728_s8 + $0x18] sm:$0xff]   ;;  %v1445_v24 = vld [vmem:[%s1728_s8 + $0x10] sm:$0xff]  }
  0x3d   : > { %1332 = vmatpush3.bf16.msra.mxu0 %v1440_v17  ;;  %1371 = vmatpush3.bf16.msra.mxu1 %v1440_v17  ;;  %v1448_v21 = vld [vmem:[%s1740_s21] sm:$0xff]   ;;  %v1446_v25 = vld [vmem:[%s1728_s8 + $0x8] sm:$0xff]   ;;  %v1452_v29 = vld [vmem:[%s1740_s21 + $0x10] sm:$0xff]  }
  0x3e   : > { %1333 = vmatprep.subr.bf16.mxu0 %v1441_v18  ;;  %1364 = vmatprep.subr.bf16.mxu1 %v1441_v18  ;;  %v1449_v22 = vld [vmem:[%s1740_s21 + $0x20] sm:$0xff]   ;;  %v1450_v27 = vld [vmem:[%s1740_s21 + $0x8] sm:$0xff]   ;;  %v1453_v30 = vld [vmem:[%s1740_s21 + $0x30] sm:$0xff]  }
  0x3f   : > { %1347 = vmatprep.mubr.bf16.mxu0 %v1448_v21  ;;  %1355 = vmatprep.mubr.bf16.mxu1 %v1449_v22  ;;  %v1447_v26 = vld [vmem:[%s1728_s8] sm:$0xff]   ;;  %v1451_v28 = vld [vmem:[%s1740_s21 + $0x28] sm:$0xff]   ;;  %v1454_v31 = vld [vmem:[%s1740_s21 + $0x18] sm:$0xff]  }
  0x40   : > { %v1455_v32 = vld [vmem:[%s1740_s21 + $0x38] sm:$0xff]   ;;  %v415_v33 = vld [vmem:[#allocation2 + $0x10] sm:$0xff]  ;;  %v413_v37 = vld [vmem:[#allocation2] sm:$0xff] }
  0x41   : > { %1334 = vmatpush3.bf16.msra.mxu0 %v1441_v18  ;;  %1372 = vmatpush3.bf16.msra.mxu1 %v1441_v18  ;;  %v423_v34 = vld [vmem:[#allocation2 + $0x50] sm:$0xff]  ;;  %v421_v38 = vld [vmem:[#allocation2 + $0x40] sm:$0xff]  ;;  %v416_v43 = vld [vmem:[#allocation2 + $0x18] sm:$0xff] }
  0x42   : > { %1335 = vmatprep.subr.bf16.mxu0 %v1442_v19  ;;  %1365 = vmatprep.subr.bf16.mxu1 %v1442_v19  ;;  %v424_v44 = vld [vmem:[#allocation2 + $0x58] sm:$0xff]  ;;  %v414_v49 = vld [vmem:[#allocation2 + $0x8] sm:$0xff]  ;;  %v419_v55 = vld [vmem:[#allocation2 + $0x30] sm:$0xff] }
  0x43   : > { %v422_v50 = vld [vmem:[#allocation2 + $0x48] sm:$0xff]  ;;  %v427_v56 = vld [vmem:[#allocation2 + $0x70] sm:$0xff]  ;;  %v417_v61 = vld [vmem:[#allocation2 + $0x20] sm:$0xff] }
  0x44   : > { %v425_v62 = vld [vmem:[#allocation2 + $0x60] sm:$0xff]  ;;  %v420_v3 = vld [vmem:[#allocation2 + $0x38] sm:$0xff]  ;;  %v418_v9 = vld [vmem:[#allocation2 + $0x28] sm:$0xff] }
  0x45   : > { %1336 = vmatpush3.bf16.msra.mxu0 %v1442_v19  ;;  %1373 = vmatpush3.bf16.msra.mxu1 %v1442_v19  ;;  %v428_v4 = vld [vmem:[#allocation2 + $0x78] sm:$0xff]  ;;  %v426_v10 = vld [vmem:[#allocation2 + $0x68] sm:$0xff] }
  0x46   : > { %1337 = vmatprep.subr.bf16.mxu0 %v1443_v20  ;;  %1366 = vmatprep.subr.bf16.mxu1 %v1443_v20 }
  0x49   : > { %1338 = vmatpush3.bf16.msra.mxu0 %v1443_v20  ;;  %1374 = vmatpush3.bf16.msra.mxu1 %v1443_v20 }
  0x4a   : > { %1339 = vmatprep.subr.bf16.mxu0 %v1444_v23  ;;  %1367 = vmatprep.subr.bf16.mxu1 %v1444_v23 }
  0x4d   : > { %1340 = vmatpush3.bf16.msra.mxu0 %v1444_v23  ;;  %1375 = vmatpush3.bf16.msra.mxu1 %v1444_v23 }
  0x4e   : > { %1341 = vmatprep.subr.bf16.mxu0 %v1445_v24  ;;  %1368 = vmatprep.subr.bf16.mxu1 %v1445_v24 }
  0x51   : > { %1342 = vmatpush3.bf16.msra.mxu0 %v1445_v24  ;;  %1376 = vmatpush3.bf16.msra.mxu1 %v1445_v24 }
  0x52   : > { %1343 = vmatprep.subr.bf16.mxu0 %v1446_v25  ;;  %1369 = vmatprep.subr.bf16.mxu1 %v1446_v25 }
  0x55   : > { %1344 = vmatpush3.bf16.msra.mxu0 %v1446_v25  ;;  %1377 = vmatpush3.bf16.msra.mxu1 %v1446_v25 }
  0x56   : > { %1345 = vmatprep.subr.bf16.mxu0 %v1447_v26  ;;  %1370 = vmatprep.subr.bf16.mxu1 %v1447_v26 }
  0x59   : > { %1346 = vmatpush3.bf16.msra.mxu0 %v1447_v26  ;;  %1378 = vmatpush3.bf16.msra.mxu1 %v1447_v26 }
  0x5c   : > { %1348 = vmatmul.mubr.bf16.vlgmr.msra.gmra.mxu0 %v1450_v27  ;;  %1356 = vmatmul.mubr.bf16.vlgmr.msra.gmra.mxu1 %v1451_v28 }
  0x5d   : > { %1351 = vmatprep.mubr.bf16.mxu0 %v1452_v29  ;;  %1359 = vmatprep.mubr.bf16.mxu1 %v1453_v30 }
  0x64   : > { %1352 = vmatmul.mubr.bf16.gmra.mxu0 %v1454_v31  ;;  %1360 = vmatmul.mubr.bf16.gmra.mxu1 %v1455_v32 }
 0x11c   : > { %v1349_v35 = vpop.f32.mrf.mxu0  ;;  %v1357_v36 = vpop.f32.mrf.mxu1 }
 0x11d   : > { %v656_v39 = vadd.f32 %v1349_v35, %v415_v33  ;;  %v664_v40 = vadd.f32 %v1357_v36, %v423_v34 }
 0x11e   : > { %v591_v41 = vpop.f32.mrf.mxu0  ;;  %v623_v42 = vpop.f32.mrf.mxu1 }
 0x11f   : > { %673 = vst.msk [vmem:[#allocation2 + $0x10] sm:$0xff] %vm670_vm1, %v656_v39  ;;  %681 = vst.msk [vmem:[#allocation2 + $0x50] sm:$0xff] %vm670_vm1, %v664_v40  ;;  %v654_v45 = vadd.f32 %v591_v41, %v413_v37  ;;  %v662_v46 = vadd.f32 %v623_v42, %v421_v38 }
 0x120   : > { %v1350_v47 = vpop.f32.mrf.mxu0  ;;  %v1358_v48 = vpop.f32.mrf.mxu1 }
 0x121   : > { %671 = vst.msk [vmem:[#allocation2] sm:$0xff] %vm670_vm1, %v654_v45  ;;  %679 = vst.msk [vmem:[#allocation2 + $0x40] sm:$0xff] %vm670_vm1, %v662_v46  ;;  %v657_v51 = vadd.f32 %v1350_v47, %v416_v43  ;;  %v665_v52 = vadd.f32 %v1358_v48, %v424_v44 }
 0x122   : > { %v594_v53 = vpop.f32.mrf.mxu0  ;;  %v626_v54 = vpop.f32.mrf.mxu1 }
 0x123   : > { %674 = vst.msk [vmem:[#allocation2 + $0x18] sm:$0xff] %vm670_vm1, %v657_v51  ;;  %682 = vst.msk [vmem:[#allocation2 + $0x58] sm:$0xff] %vm670_vm1, %v665_v52  ;;  %v655_v57 = vadd.f32 %v594_v53, %v414_v49  ;;  %v663_v58 = vadd.f32 %v626_v54, %v422_v50 }
 0x124   : > { %v1353_v59 = vpop.f32.mrf.mxu0  ;;  %v1361_v60 = vpop.f32.mrf.mxu1 }
 0x125   : > { %672 = vst.msk [vmem:[#allocation2 + $0x8] sm:$0xff] %vm670_vm1, %v655_v57  ;;  %680 = vst.msk [vmem:[#allocation2 + $0x48] sm:$0xff] %vm670_vm1, %v663_v58  ;;  %v660_v63 = vadd.f32 %v1353_v59, %v419_v55  ;;  %v668_v0 = vadd.f32 %v1361_v60, %v427_v56 }
 0x126   : > { %v607_v1 = vpop.f32.mrf.mxu0  ;;  %v639_v2 = vpop.f32.mrf.mxu1 }
 0x127   : > { %677 = vst.msk [vmem:[#allocation2 + $0x30] sm:$0xff] %vm670_vm1, %v660_v63  ;;  %685 = vst.msk [vmem:[#allocation2 + $0x70] sm:$0xff] %vm670_vm1, %v668_v0  ;;  %v658_v5 = vadd.f32 %v607_v1, %v417_v61  ;;  %v666_v6 = vadd.f32 %v639_v2, %v425_v62 }
 0x128   : > { %v1354_v7 = vpop.f32.mrf.mxu0  ;;  %v1362_v8 = vpop.f32.mrf.mxu1 }
 0x129   : > { %675 = vst.msk [vmem:[#allocation2 + $0x20] sm:$0xff] %vm670_vm1, %v658_v5  ;;  %683 = vst.msk [vmem:[#allocation2 + $0x60] sm:$0xff] %vm670_vm1, %v666_v6  ;;  %v661_v11 = vadd.f32 %v1354_v7, %v420_v3  ;;  %v669_v12 = vadd.f32 %v1362_v8, %v428_v4  ;;  %690 = sbr.rel (%p1301_p13) target bundleno = 879 (0x36f), region = 89 }
 0x12a   : > { %v610_v13 = vpop.f32.mrf.mxu0  ;;  %v642_v14 = vpop.f32.mrf.mxu1 }
 0x12b   : > { %678 = vst.msk [vmem:[#allocation2 + $0x38] sm:$0xff] %vm670_vm1, %v661_v11  ;;  %686 = vst.msk [vmem:[#allocation2 + $0x78] sm:$0xff] %vm670_vm1, %v669_v12  ;;  %v659_v15 = vadd.f32 %v610_v13, %v418_v9  ;;  %v667_v16 = vadd.f32 %v642_v14, %v426_v10 }
 0x12d   : > { %676 = vst.msk [vmem:[#allocation2 + $0x28] sm:$0xff] %vm670_vm1, %v659_v15  ;;  %684 = vst.msk [vmem:[#allocation2 + $0x68] sm:$0xff] %vm670_vm1, %v667_v16 }
 0x12e   : > { %v715_v17 = vld [vmem:[%s2134_s2] sm:$0xff]  ;;  %vm757_vm2 = vcmask 1043456   ;;  %v692_v19 = vld [vmem:[#allocation2 + $0x8] sm:$0xff]  ;;  %v1611_v22 = vmov 0   ;;  %v693_v28 = vld [vmem:[#allocation2 + $0x10] sm:$0xff]  ;;  %v718_v46 = vlaneseq }
 0x12f   : > { %v691_v18 = vld [vmem:[#allocation2] sm:$0xff]  ;;  %v1303_v20 = vcombine.high %v715_v17, %v715_v17  ;;  %v1302_v21 = vcombine.low %v715_v17, %v715_v17  ;;  %796 = vmatprep.mubr.bf16.mxu0 %v1611_v22  ;;  %836 = vmatprep.mubr.bf16.mxu1 %v1611_v22  ;;  %v700_v24 = vld [vmem:[#allocation2 + $0x48] sm:$0xff]  ;;  %v694_v29 = vld [vmem:[#allocation2 + $0x18] sm:$0xff] }
 0x130   : > { %v699_v23 = vld [vmem:[#allocation2 + $0x40] sm:$0xff]  ;;  %v707_v26 = vpack.c.bf16 %v692_v19, %v691_v18  ;;  %v701_v30 = vld [vmem:[#allocation2 + $0x50] sm:$0xff]  ;;  %v702_v31 = vld [vmem:[#allocation2 + $0x58] sm:$0xff]  ;;  %v708_v32 = vpack.c.bf16 %v694_v29, %v693_v28  ;;  %v719_v47 = vshrl.u32 %v718_v46, 7 }
 0x131   : > { %1304 = vmatprep.subr.msk.bf16.mxu0 %vm757_vm2, %v1303_v20  ;;  %1379 = vmatprep.subr.msk.bf16.mxu1 %vm757_vm2, %v1303_v20  ;;  %v759_v25 = vsel %vm757_vm2, %v1302_v21, 0  ;;  %v711_v27 = vpack.c.bf16 %v700_v24, %v699_v23  ;;  %v712_v33 = vpack.c.bf16 %v702_v31, %v701_v30  ;;  %v695_v34 = vld [vmem:[#allocation2 + $0x20] sm:$0xff]  ;;  %v697_v40 = vld [vmem:[#allocation2 + $0x30] sm:$0xff]  ;;  %v1834_v23 = vand.u32 127, %v718_v46 }
 0x132   : > { %779 = vmatpush1.bf16.msra.mxu0 %v759_v25  ;;  %1380 = vmatpush1.bf16.msra.mxu1 %v759_v25  ;;  %v703_v36 = vld [vmem:[#allocation2 + $0x60] sm:$0xff]  ;;  %v698_v41 = vld [vmem:[#allocation2 + $0x38] sm:$0xff]  ;;  %v705_v42 = vld [vmem:[#allocation2 + $0x70] sm:$0xff]  ;;  %v724_v48 = vsub.s32 1, %v719_v47  ;;  %v720_v13 = vsub.s32 0, %v719_v47 }
 0x133   : > { %v706_v43 = vld [vmem:[#allocation2 + $0x78] sm:$0xff]  ;;  %v710_v44 = vpack.c.bf16 %v698_v41, %v697_v40  ;;  %v716_v49 = vld [vmem:[%s2135_s3] sm:$0x3]  ;;  %vm959_vm3 = vcmp.lt.s32.totalorder %v1834_v23, 8 }
 0x134   : > { %v696_v35 = vld [vmem:[#allocation2 + $0x28] sm:$0xff]  ;;  %v714_v45 = vpack.c.bf16 %v706_v43, %v705_v42  ;;  %v1806_v50 = vrot.slane %v716_v49, %v724_v48  ;;  %v877_v28 = vld [vmem:[%s1733_s12] sm:$0xff] }
 0x135   : > { %1305 = vmatmul.mubr.msk.bf16.vlgmr.msra.gmra.mxu0 %vm670_vm1, %v707_v26  ;;  %1309 = vmatmul.mubr.msk.bf16.vlgmr.msra.gmra.mxu1 %vm670_vm1, %v711_v27  ;;  %v704_v37 = vld [vmem:[#allocation2 + $0x68] sm:$0xff]  ;;  %v709_v38 = vpack.c.bf16 %v696_v35, %v695_v34  ;;  %v885_v29 = vld [vmem:[%s1733_s12 + $0x40] sm:$0xff] }
 0x136   : > { %806 = vmatprep.mubr.bf16.mxu0 %v1611_v22  ;;  %846 = vmatprep.mubr.bf16.mxu1 %v1611_v22  ;;  %v713_v39 = vpack.c.bf16 %v704_v37, %v703_v36 }
 0x13d   : > { %1306 = vmatmul.mubr.msk.bf16.gmra.mxu0 %vm670_vm1, %v708_v32  ;;  %1310 = vmatmul.mubr.msk.bf16.gmra.mxu1 %vm670_vm1, %v712_v33 }
 0x13e   : > { %816 = vmatprep.mubr.bf16.mxu0 %v1611_v22  ;;  %856 = vmatprep.mubr.bf16.mxu1 %v1611_v22 }
 0x145   : > { %1307 = vmatmul.mubr.msk.bf16.gmra.mxu0 %vm670_vm1, %v709_v38  ;;  %1311 = vmatmul.mubr.msk.bf16.gmra.mxu1 %vm670_vm1, %v713_v39 }
 0x146   : > { %826 = vmatprep.mubr.bf16.mxu0 %v1611_v22  ;;  %866 = vmatprep.mubr.bf16.mxu1 %v1611_v22  ;;  %v1832_v22 = vrot.slane %v716_v49, %v720_v13 }
 0x14d   : > { %1308 = vmatmul.mubr.msk.bf16.gmra.mxu0 %vm670_vm1, %v710_v44  ;;  %1312 = vmatmul.mubr.msk.bf16.gmra.mxu1 %vm670_vm1, %v714_v45  ;;  %v886_v44 = vld [vmem:[%s1733_s12 + $0x48] sm:$0xff] }
 0x14e   : > { %v878_v45 = vld [vmem:[%s1733_s12 + $0x8] sm:$0xff] }
 0x1f5   : > { %v798_v51 = vpop.f32.mrf.mxu0  ;;  %v838_v52 = vpop.f32.mrf.mxu1 }
 0x1f6   : > { %v799_v36 = vadd.f32 %v798_v51, %v1832_v22  ;;  %v839_v41 = vadd.f32 %v838_v52, %v1832_v22 }
 0x1f7   : > { %v800_v53 = vpop.f32.mrf.mxu0  ;;  %v840_v54 = vpop.f32.mrf.mxu1 }
 0x1f8   : > { %v801_v55 = vadd.f32 %v800_v53, %v1806_v50  ;;  %v841_v56 = vadd.f32 %v840_v54, %v1806_v50 }
 0x1f9   : > { %v1810_v57 = vpop.f32.mrf.mxu0  ;;  %v1812_v58 = vpop.f32.mrf.mxu1 }
 0x1fa   : > { %v893_v59 = vmul.f32 1.442695, %v801_v55  ;;  %v909_v60 = vmul.f32 1.442695, %v841_v56  ;;  %v843_v55 = vadd.f32 %v1812_v58, %v1832_v22  ;;  %v803_v58 = vadd.f32 %v1810_v57, %v1832_v22 }
 0x1fb   : > { %v804_v61 = vpop.f32.mrf.mxu0  ;;  %v844_v62 = vpop.f32.mrf.mxu1 }
 0x1fc   : > { %1458 = vpow2.f32 %v893_v59  ;;  %v805_v63 = vadd.f32 %v804_v61, %v1806_v50  ;;  %v845_v0 = vadd.f32 %v844_v62, %v1806_v50 }
 0x1fd   : > { %1460 = vpow2.f32 %v909_v60  ;;  %v1816_v1 = vpop.f32.mrf.mxu0  ;;  %v1818_v2 = vpop.f32.mrf.mxu1 }
 0x1fe   : > { %v895_v3 = vmul.f32 1.442695, %v805_v63  ;;  %v911_v4 = vmul.f32 1.442695, %v845_v0 }
 0x1ff   : > { %v810_v5 = vpop.f32.mrf.mxu0  ;;  %v850_v6 = vpop.f32.mrf.mxu1 }
 0x200   : > { %1462 = vpow2.f32 %v895_v3  ;;  %v811_v7 = vadd.f32 %v810_v5, %v1806_v50  ;;  %v851_v8 = vadd.f32 %v850_v6, %v1806_v50  ;;  %v879_v3 = vld [vmem:[%s1733_s12 + $0x10] sm:$0xff] }
 0x201   : > { %1464 = vpow2.f32 %v911_v4  ;;  %v1822_v9 = vpop.f32.mrf.mxu0  ;;  %v1824_v10 = vpop.f32.mrf.mxu1  ;;  %v887_v4 = vld [vmem:[%s1733_s12 + $0x50] sm:$0xff] }
 0x202   : > { %v897_v11 = vmul.f32 1.442695, %v811_v7  ;;  %v913_v12 = vmul.f32 1.442695, %v851_v8 }
 0x203   : > { %v814_v14 = vpop.f32.mrf.mxu0  ;;  %v854_v15 = vpop.f32.mrf.mxu1 }
 0x204   : > { %1466 = vpow2.f32 %v897_v11  ;;  %v815_v16 = vadd.f32 %v814_v14, %v1806_v50  ;;  %v855_v17 = vadd.f32 %v854_v15, %v1806_v50 }
 0x205   : > { %1468 = vpow2.f32 %v913_v12  ;;  %v1828_v18 = vpop.f32.mrf.mxu0  ;;  %v1830_v19 = vpop.f32.mrf.mxu1  ;;  %v809_v12 = vadd.f32 %v1816_v1, %v1832_v22 }
 0x206   : > { %v899_v20 = vmul.f32 1.442695, %v815_v16  ;;  %v915_v21 = vmul.f32 1.442695, %v855_v17 }
 0x207   : > { %v820_v24 = vpop.f32.mrf.mxu0  ;;  %v860_v25 = vpop.f32.mrf.mxu1 }
 0x208   : > { %1470 = vpow2.f32 %v899_v20  ;;  %v821_v26 = vadd.f32 %v820_v24, %v1806_v50  ;;  %v861_v27 = vadd.f32 %v860_v25, %v1806_v50  ;;  %v880_v24 = vld [vmem:[%s1733_s12 + $0x18] sm:$0xff] }
 0x209   : > { %v1459_v30 = vpop.eup %1458  ;;  %1472 = vpow2.f32 %v915_v21  ;;  %v1840_v31 = vpop.f32.mrf.mxu0 }
 0x20a   : > { %v1842_v32 = vpop.f32.mrf.mxu1  ;;  %v1461_v33 = vpop.eup %1460  ;;  %v901_v34 = vmul.f32 1.442695, %v821_v26  ;;  %v917_v35 = vmul.f32 1.442695, %v861_v27  ;;  %v925_v39 = vmul.f32 %v1459_v30, %v877_v28  ;;  %v888_v27 = vld [vmem:[%s1733_s12 + $0x58] sm:$0xff] }
 0x20b   : > { %v824_v37 = vpop.f32.mrf.mxu0  ;;  %v933_v40 = vmul.f32 %v1461_v33, %v885_v29  ;;  %v849_v29 = vadd.f32 %v1818_v2, %v1832_v22 }
 0x20c   : > { %v864_v38 = vpop.f32.mrf.mxu1  ;;  %1474 = vpow2.f32 %v901_v34  ;;  %v825_v42 = vadd.f32 %v824_v37, %v1806_v50  ;;  %v941_v49 = vadd.f32 %v925_v39, %v799_v36  ;;  %v813_v34 = vadd.f32 %v1822_v9, %v1832_v22 }
 0x20d   : > { %v865_v43 = vadd.f32 %v864_v38, %v1806_v50  ;;  %v1463_v46 = vpop.eup %1462  ;;  %1476 = vpow2.f32 %v917_v35  ;;  %v1851_v47 = vpop.f32.mrf.mxu0  ;;  %v949_v52 = vadd.f32 %v933_v40, %v839_v41  ;;  %v881_v40 = vld [vmem:[%s1733_s12 + $0x20] sm:$0xff] }
 0x20e   : > { %v1853_v48 = vpop.f32.mrf.mxu1  ;;  %v1465_v51 = vpop.eup %1464  ;;  %v903_v53 = vmul.f32 1.442695, %v825_v42  ;;  %v1859_v60 = vsel %vm959_vm3, %v941_v49, -inf  ;;  %v926_v62 = vmul.f32 %v1463_v46, %v878_v45  ;;  %v889_v41 = vld [vmem:[%s1733_s12 + $0x60] sm:$0xff]  ;;  %v819_v45 = vadd.f32 %v1828_v18, %v1832_v22  ;;  %v890_v18 = vld [vmem:[%s1733_s12 + $0x68] sm:$0xff] }
 0x20f   : > { %v919_v54 = vmul.f32 1.442695, %v865_v43  ;;  %v830_v56 = vpop.f32.mrf.mxu0  ;;  %v934_v61 = vmul.f32 %v1465_v51, %v886_v44  ;;  %976 = vmax.xlane.f32.xlu0 %v1859_v60  ;;  %v1876_v15 = vsel %vm959_vm3, %v949_v52, -inf  ;;  %v853_v43 = vadd.f32 %v1824_v10, %v1832_v22 }
 0x210   : > { %v870_v59 = vpop.f32.mrf.mxu1  ;;  %1478 = vpow2.f32 %v903_v53  ;;  %v831_v63 = vadd.f32 %v830_v56, %v1806_v50  ;;  %v942_v21 = vadd.f32 %v926_v62, %v803_v58  ;;  %v859_v56 = vadd.f32 %v1830_v19, %v1832_v22 }
 0x211   : > { %v871_v0 = vadd.f32 %v870_v59, %v1806_v50  ;;  %v1467_v5 = vpop.eup %1466  ;;  %1480 = vpow2.f32 %v919_v54  ;;  %v1868_v6 = vpop.f32.mrf.mxu0  ;;  %v950_v8 = vadd.f32 %v934_v61, %v843_v55  ;;  %v882_v54 = vld [vmem:[%s1733_s12 + $0x28] sm:$0xff]  ;;  %v823_v61 = vadd.f32 %v1840_v31, %v1832_v22  ;;  %v891_v31 = vld [vmem:[%s1733_s12 + $0x70] sm:$0xff] }
 0x212   : > { %v1870_v7 = vpop.f32.mrf.mxu1  ;;  %v1469_v11 = vpop.eup %1468  ;;  %v905_v13 = vmul.f32 1.442695, %v831_v63  ;;  %v927_v20 = vmul.f32 %v1467_v5, %v879_v3  ;;  %v1898_v38 = vsel %vm959_vm3, %v942_v21, -inf  ;;  %v883_v5 = vld [vmem:[%s1733_s12 + $0x30] sm:$0xff]  ;;  %v884_v21 = vld [vmem:[%s1733_s12 + $0x38] sm:$0xff] }
 0x213   : > { %v921_v14 = vmul.f32 1.442695, %v871_v0  ;;  %v1880_v57 = vsel %vm959_vm3, %v950_v8, -inf  ;;  %v834_v17 = vpop.f32.mrf.mxu0  ;;  %v935_v25 = vmul.f32 %v1469_v11, %v887_v4  ;;  %992 = vmax.xlane.f32.xlu0 %v1876_v15  ;;  %v863_v8 = vadd.f32 %v1842_v32, %v1832_v22 }
 0x214   : > { %v874_v16 = vpop.f32.mrf.mxu1  ;;  %1482 = vpow2.f32 %v905_v13  ;;  %994 = vmax.xlane.f32.xlu1 %v1880_v57  ;;  %v835_v26 = vadd.f32 %v834_v17, %v1806_v50  ;;  %v943_v30 = vadd.f32 %v927_v20, %v809_v12  ;;  %v829_v12 = vadd.f32 %v1851_v47, %v1832_v22 }
 0x215   : > { %v875_v1 = vadd.f32 %v874_v16, %v1806_v50  ;;  %v1471_v28 = vpop.eup %1470  ;;  %1484 = vpow2.f32 %v921_v14  ;;  %v951_v39 = vadd.f32 %v935_v25, %v849_v29  ;;  %v869_v47 = vadd.f32 %v1853_v48, %v1832_v22 }
 0x216   : > { %v1473_v33 = vpop.eup %1472  ;;  %v907_v36 = vmul.f32 1.442695, %v835_v26  ;;  %v928_v37 = vmul.f32 %v1471_v28, %v880_v24  ;;  %v1894_v50 = vsel %vm959_vm3, %v943_v30, -inf  ;;  %v892_v24 = vld [vmem:[%s1733_s12 + $0x78] sm:$0xff]  ;;  %v833_v26 = vadd.f32 %v1868_v6, %v1832_v22 }
 0x217   : > { %v923_v35 = vmul.f32 1.442695, %v875_v1  ;;  %v936_v2 = vmul.f32 %v1473_v33, %v888_v27  ;;  %978 = vmax.xlane.f32.xlu0 %v1898_v38  ;;  %v1914_v51 = vsel %vm959_vm3, %v951_v39, -inf  ;;  %v873_v48 = vadd.f32 %v1870_v7, %v1832_v22 }
 0x218   : > { %980 = vmax.xlane.f32.xlu1 %v1894_v50  ;;  %v944_v9 = vadd.f32 %v928_v37, %v813_v34 }
 0x219   : > { %1486 = vpow2.f32 %v923_v35  ;;  %v1475_v42 = vpop.eup %1474  ;;  %v952_v53 = vadd.f32 %v936_v2, %v853_v43 }
 0x21a   : > { %1488 = vpow2.f32 %v907_v36  ;;  %v1477_v44 = vpop.eup %1476  ;;  %v1910_v46 = vsel %vm959_vm3, %v944_v9, -inf  ;;  %v929_v49 = vmul.f32 %v1475_v42, %v881_v40 }
 0x21b   : > { %v937_v52 = vmul.f32 %v1477_v44, %v889_v41  ;;  %996 = vmax.xlane.f32.xlu0 %v1914_v51  ;;  %v1930_v0 = vsel %vm959_vm3, %v952_v53, -inf }
 0x21c   : > { %982 = vmax.xlane.f32.xlu1 %v1910_v46  ;;  %v945_v10 = vadd.f32 %v929_v49, %v819_v45 }
 0x21d   : > { %v1479_v55 = vpop.eup %1478  ;;  %v953_v3 = vadd.f32 %v937_v52, %v859_v56 }
 0x21e   : > { %v1481_v59 = vpop.eup %1480  ;;  %v1926_v62 = vsel %vm959_vm3, %v945_v10, -inf  ;;  %v930_v63 = vmul.f32 %v1479_v55, %v882_v54 }
 0x21f   : > { %v938_v4 = vmul.f32 %v1481_v59, %v890_v18  ;;  %984 = vmax.xlane.f32.xlu0 %v1926_v62  ;;  %v1946_v16 = vsel %vm959_vm3, %v953_v3, -inf }
 0x220   : > { %998 = vmax.xlane.f32.xlu1 %v1930_v0  ;;  %v946_v19 = vadd.f32 %v930_v63, %v823_v61 }
 0x221   : > { %v1483_v58 = vpop.eup %1482  ;;  %v954_v17 = vadd.f32 %v938_v4, %v863_v8 }
 0x222   : > { %v1485_v11 = vpop.eup %1484  ;;  %v1942_v13 = vsel %vm959_vm3, %v946_v19, -inf  ;;  %v931_v14 = vmul.f32 %v1483_v58, %v883_v5 }
 0x223   : > { %v939_v20 = vmul.f32 %v1485_v11, %v891_v31  ;;  %1000 = vmax.xlane.f32.xlu0 %v1946_v16  ;;  %v1962_v28 = vsel %vm959_vm3, %v954_v17, -inf }
 0x224   : > { %986 = vmax.xlane.f32.xlu1 %v1942_v13  ;;  %v947_v32 = vadd.f32 %v931_v14, %v829_v12 }
 0x225   : > { %v955_v30 = vadd.f32 %v939_v20, %v869_v47 }
 0x226   : > { %v1487_v25 = vpop.eup %1486  ;;  %v1958_v27 = vsel %vm959_vm3, %v947_v32, -inf }
 0x227   : > { %v1489_v1 = vpop.eup %1488  ;;  %v940_v33 = vmul.f32 %v1487_v25, %v892_v24  ;;  %988 = vmax.xlane.f32.xlu0 %v1958_v27  ;;  %v1974_v35 = vsel %vm959_vm3, %v955_v30, -inf }
 0x228   : > { %v932_v29 = vmul.f32 %v1489_v1, %v884_v21  ;;  %1002 = vmax.xlane.f32.xlu1 %v1962_v28 }
 0x229   : > { %v956_v36 = vadd.f32 %v940_v33, %v873_v48 }
 0x22a   : > { %v948_v34 = vadd.f32 %v932_v29, %v833_v26 }
 0x22b   : > { %1004 = vmax.xlane.f32.xlu0 %v1974_v35  ;;  %v1980_v37 = vsel %vm959_vm3, %v956_v36, -inf }
 0x22c   : > { %v1970_v6 = vsel %vm959_vm3, %v948_v34, -inf }
 0x22d   : > { %990 = vmax.xlane.f32.xlu1 %v1970_v6 }
 0x231   : > { %1006 = vmax.xlane.f32.xlu1 %v1980_v37 }
 0x298   : > { %v977_v22 = vpop.xlane.xlu0 %976 }
 0x299   : > { %v1984_v7 = vsub.f32 %v1859_v60, %v977_v22 }
 0x29b   : > { %v1024_v39 = vmul.f32 1.442695, %v1984_v7 }
 0x29c   : > { %v993_v40 = vpop.xlane.xlu0 %992 }
 0x29d   : > { %v995_v2 = vpop.xlane.xlu1 %994  ;;  %1490 = vpow2.f32 %v1024_v39  ;;  %v1988_v9 = vsub.f32 %v1876_v15, %v993_v40 }
 0x29e   : > { %v1992_v42 = vsub.f32 %v1880_v57, %v995_v2 }
 0x29f   : > { %v1040_v41 = vmul.f32 1.442695, %v1988_v9 }
 0x2a0   : > { %v979_v44 = vpop.xlane.xlu0 %978  ;;  %v1042_v15 = vmul.f32 1.442695, %v1992_v42 }
 0x2a1   : > { %v981_v43 = vpop.xlane.xlu1 %980  ;;  %v1998_v60 = vsub.f32 %v1898_v38, %v979_v44  ;;  %1492 = vpow2.f32 %v1040_v41 }
 0x2a2   : > { %v1995_v45 = vsub.f32 %v1894_v50, %v981_v43 }
 0x2a3   : > { %v1026_v53 = vmul.f32 1.442695, %v1998_v60 }
 0x2a4   : > { %v1028_v49 = vmul.f32 1.442695, %v1995_v45  ;;  %v997_v52 = vpop.xlane.xlu0 %996 }
 0x2a5   : > { %v983_v54 = vpop.xlane.xlu1 %982  ;;  %v2007_v10 = vsub.f32 %v1914_v51, %v997_v52 }
 0x2a6   : > { %1494 = vpow2.f32 %v1028_v49  ;;  %v2004_v57 = vsub.f32 %v1910_v46, %v983_v54 }
 0x2a7   : > { %1496 = vpow2.f32 %v1026_v53  ;;  %v1044_v50 = vmul.f32 1.442695, %v2007_v10 }
 0x2a8   : > { %1498 = vpow2.f32 %v1042_v15  ;;  %v1030_v38 = vmul.f32 1.442695, %v2004_v57  ;;  %v985_v55 = vpop.xlane.xlu0 %984 }
 0x2a9   : > { %v999_v18 = vpop.xlane.xlu1 %998  ;;  %v2015_v59 = vsub.f32 %v1926_v62, %v985_v55  ;;  %1500 = vpow2.f32 %v1044_v50 }
 0x2aa   : > { %v2012_v56 = vsub.f32 %v1930_v0, %v999_v18  ;;  %v1491_v61 = vpop.eup %1490  ;;  %1502 = vpow2.f32 %v1030_v38 }
 0x2ab   : > { %v1032_v46 = vmul.f32 1.442695, %v2015_v59  ;;  %v1056_v51 = vsel %vm959_vm3, %v1491_v61, 0.0 }
 0x2ac   : > { %v1046_v63 = vmul.f32 1.442695, %v2012_v56  ;;  %1072 = vadd.xlane.f32.xlu0 %v1056_v51  ;;  %v1001_v4 = vpop.xlane.xlu0 %1000 }
 0x2ad   : > { %v987_v3 = vpop.xlane.xlu1 %986  ;;  %v2025_v0 = vsub.f32 %v1946_v16, %v1001_v4  ;;  %1504 = vpow2.f32 %v1032_v46 }
 0x2ae   : > { %v2022_v5 = vsub.f32 %v1942_v13, %v987_v3  ;;  %v1493_v62 = vpop.eup %1492  ;;  %1506 = vpow2.f32 %v1046_v63 }
 0x2af   : > { %v1048_v19 = vmul.f32 1.442695, %v2025_v0  ;;  %v1064_v8 = vsel %vm959_vm3, %v1493_v62, 0.0 }
 0x2b0   : > { %v1034_v31 = vmul.f32 1.442695, %v2022_v5  ;;  %v989_v11 = vpop.xlane.xlu0 %988  ;;  %1088 = vadd.xlane.f32.xlu0 %v1064_v8 }
 0x2b1   : > { %v1003_v58 = vpop.xlane.xlu1 %1002  ;;  %v2035_v13 = vsub.f32 %v1958_v27, %v989_v11  ;;  %1508 = vpow2.f32 %v1048_v19 }
 0x2b2   : > { %v2032_v12 = vsub.f32 %v1962_v28, %v1003_v58  ;;  %1510 = vpow2.f32 %v1034_v31 }
 0x2b3   : > { %v1495_v14 = vpop.eup %1494  ;;  %v1036_v17 = vmul.f32 1.442695, %v2035_v13 }
 0x2b4   : > { %v1497_v16 = vpop.eup %1496  ;;  %v1058_v20 = vsel %vm959_vm3, %v1495_v14, 0.0  ;;  %v1050_v32 = vmul.f32 1.442695, %v2032_v12  ;;  %v1005_v25 = vpop.xlane.xlu0 %1004 }
 0x2b5   : > { %v1057_v24 = vsel %vm959_vm3, %v1497_v16, 0.0  ;;  %v1499_v47 = vpop.eup %1498  ;;  %1076 = vadd.xlane.f32.xlu0 %v1058_v20  ;;  %v2047_v26 = vsub.f32 %v1974_v35, %v1005_v25  ;;  %1512 = vpow2.f32 %v1036_v17 }
 0x2b6   : > { %v991_v21 = vpop.xlane.xlu1 %990  ;;  %1074 = vadd.xlane.f32.xlu1 %v1057_v24  ;;  %v1501_v27 = vpop.eup %1500  ;;  %1514 = vpow2.f32 %v1050_v32  ;;  %v1065_v33 = vsel %vm959_vm3, %v1499_v47, 0.0 }
 0x2b7   : > { %v2044_v1 = vsub.f32 %v1970_v6, %v991_v21  ;;  %v1052_v28 = vmul.f32 1.442695, %v2047_v26  ;;  %v1066_v48 = vsel %vm959_vm3, %v1501_v27, 0.0  ;;  %v1503_v34 = vpop.eup %1502 }
 0x2b8   : > { %v1059_v22 = vsel %vm959_vm3, %v1503_v34, 0.0 }
 0x2b9   : > { %v1038_v29 = vmul.f32 1.442695, %v2044_v1  ;;  %1092 = vadd.xlane.f32.xlu0 %v1066_v48  ;;  %1516 = vpow2.f32 %v1052_v28 }
 0x2ba   : > { %v1007_v30 = vpop.xlane.xlu1 %1006  ;;  %1090 = vadd.xlane.f32.xlu1 %v1065_v33  ;;  %v1505_v35 = vpop.eup %1504 }
 0x2bb   : > { %v2056_v6 = vsub.f32 %v1980_v37, %v1007_v30  ;;  %1518 = vpow2.f32 %v1038_v29  ;;  %v1060_v39 = vsel %vm959_vm3, %v1505_v35, 0.0  ;;  %v1507_v2 = vpop.eup %1506 }
 0x2bc   : > { %v1067_v37 = vsel %vm959_vm3, %v1507_v2, 0.0 }
 0x2bd   : > { %v1054_v36 = vmul.f32 1.442695, %v2056_v6  ;;  %1080 = vadd.xlane.f32.xlu0 %v1060_v39 }
 0x2be   : > { %1078 = vadd.xlane.f32.xlu1 %v1059_v22  ;;  %v1509_v40 = vpop.eup %1508 }
 0x2bf   : > { %1520 = vpow2.f32 %v1054_v36  ;;  %v1068_v41 = vsel %vm959_vm3, %v1509_v40, 0.0  ;;  %v1511_v43 = vpop.eup %1510 }
 0x2c0   : > { %v1061_v49 = vsel %vm959_vm3, %v1511_v43, 0.0 }
 0x2c1   : > { %1096 = vadd.xlane.f32.xlu0 %v1068_v41 }
 0x2c2   : > { %1094 = vadd.xlane.f32.xlu1 %v1067_v37  ;;  %v1513_v44 = vpop.eup %1512 }
 0x2c3   : > { %v1062_v53 = vsel %vm959_vm3, %v1513_v44, 0.0  ;;  %v1515_v15 = vpop.eup %1514 }
 0x2c4   : > { %v1069_v52 = vsel %vm959_vm3, %v1515_v15, 0.0 }
 0x2c5   : > { %1084 = vadd.xlane.f32.xlu0 %v1062_v53 }
 0x2c6   : > { %1082 = vadd.xlane.f32.xlu1 %v1061_v49  ;;  %v1517_v54 = vpop.eup %1516 }
 0x2c7   : > { %v1070_v50 = vsel %vm959_vm3, %v1517_v54, 0.0 }
 0x2c8   : > { %v1519_v38 = vpop.eup %1518 }
 0x2c9   : > { %1100 = vadd.xlane.f32.xlu0 %v1070_v50  ;;  %v1063_v18 = vsel %vm959_vm3, %v1519_v38, 0.0 }
 0x2ca   : > { %1098 = vadd.xlane.f32.xlu1 %v1069_v52 }
 0x2cc   : > { %v1521_v55 = vpop.eup %1520 }
 0x2cd   : > { %v1071_v61 = vsel %vm959_vm3, %v1521_v55, 0.0 }
 0x2ce   : > { %1086 = vadd.xlane.f32.xlu1 %v1063_v18 }
 0x2d2   : > { %1102 = vadd.xlane.f32.xlu1 %v1071_v61 }
 0x335   : > { %v1073_v46 = vpop.xlane.xlu0 %1072 }
 0x336   : > { %1522 = vlog2.f32 %v1073_v46 }
 0x339   : > { %v1089_v51 = vpop.xlane.xlu0 %1088 }
 0x33a   : > { %1524 = vlog2.f32 %v1089_v51 }
 0x33e   : > { %v1077_v3 = vpop.xlane.xlu0 %1076 }
 0x33f   : > { %v1075_v63 = vpop.xlane.xlu1 %1074 }
 0x340   : > { %1526 = vlog2.f32 %v1075_v63 }
 0x341   : > { %1528 = vlog2.f32 %v1077_v3 }
 0x342   : > { %v1093_v62 = vpop.xlane.xlu0 %1092 }
 0x343   : > { %v1091_v4 = vpop.xlane.xlu1 %1090  ;;  %v1523_v19 = vpop.eup %1522 }
 0x344   : > { %1530 = vlog2.f32 %v1091_v4  ;;  %v1105_v31 = vmul.f32 0.6931472, %v1523_v19 }
 0x345   : > { %1532 = vlog2.f32 %v1093_v62 }
 0x346   : > { %v1136_v23 = vsub.f32 %v1984_v7, %v1105_v31  ;;  %v1081_v8 = vpop.xlane.xlu0 %1080 }
 0x347   : > { %v1079_v58 = vpop.xlane.xlu1 %1078  ;;  %v1525_v11 = vpop.eup %1524 }
 0x348   : > { %1534 = vlog2.f32 %v1079_v58  ;;  %1152 = vst [vmem:[%s1738_s14] sm:$0xff] %v1136_v23  ;;  %v1121_v14 = vmul.f32 0.6931472, %v1525_v11 }
 0x349   : > { %1536 = vlog2.f32 %v1081_v8 }
 0x34a   : > { %v1097_v17 = vpop.xlane.xlu0 %1096  ;;  %v1144_v20 = vsub.f32 %v1988_v9, %v1121_v14 }
 0x34b   : > { %v1095_v16 = vpop.xlane.xlu1 %1094 }
 0x34c   : > { %1538 = vlog2.f32 %v1095_v16  ;;  %1160 = vst [vmem:[%s1738_s14 + $0x40] sm:$0xff] %v1144_v20 }
 0x34d   : > { %v1527_v32 = vpop.eup %1526  ;;  %1540 = vlog2.f32 %v1097_v17 }
 0x34e   : > { %v1529_v21 = vpop.eup %1528  ;;  %v1107_v24 = vmul.f32 0.6931472, %v1527_v32  ;;  %v1085_v47 = vpop.xlane.xlu0 %1084 }
 0x34f   : > { %v1109_v7 = vmul.f32 0.6931472, %v1529_v21  ;;  %v1083_v25 = vpop.xlane.xlu1 %1082 }
 0x350   : > { %v1137_v27 = vsub.f32 %v1998_v60, %v1107_v24  ;;  %1542 = vlog2.f32 %v1083_v25 }
 0x351   : > { %v1531_v28 = vpop.eup %1530  ;;  %v1138_v29 = vsub.f32 %v1995_v45, %v1109_v7  ;;  %1544 = vlog2.f32 %v1085_v47 }
 0x352   : > { %v1533_v9 = vpop.eup %1532  ;;  %1153 = vst [vmem:[%s1738_s14 + $0x8] sm:$0xff] %v1137_v27  ;;  %v1123_v30 = vmul.f32 0.6931472, %v1531_v28  ;;  %v1101_v34 = vpop.xlane.xlu0 %1100 }
 0x353   : > { %1154 = vst [vmem:[%s1738_s14 + $0x10] sm:$0xff] %v1138_v29  ;;  %v1125_v33 = vmul.f32 0.6931472, %v1533_v9  ;;  %v1099_v48 = vpop.xlane.xlu1 %1098 }
 0x354   : > { %v1145_v35 = vsub.f32 %v1992_v42, %v1123_v30  ;;  %1546 = vlog2.f32 %v1099_v48 }
 0x355   : > { %v1535_v36 = vpop.eup %1534  ;;  %v1146_v60 = vsub.f32 %v2007_v10, %v1125_v33  ;;  %1548 = vlog2.f32 %v1101_v34 }
 0x356   : > { %v1537_v22 = vpop.eup %1536  ;;  %1161 = vst [vmem:[%s1738_s14 + $0x48] sm:$0xff] %v1145_v35  ;;  %v1111_v45 = vmul.f32 0.6931472, %v1535_v36 }
 0x357   : > { %1162 = vst [vmem:[%s1738_s14 + $0x50] sm:$0xff] %v1146_v60  ;;  %v1113_v39 = vmul.f32 0.6931472, %v1537_v22  ;;  %v1087_v2 = vpop.xlane.xlu1 %1086 }
 0x358   : > { %v1139_v40 = vsub.f32 %v2004_v57, %v1111_v45  ;;  %1550 = vlog2.f32 %v1087_v2 }
 0x359   : > { %v1539_v37 = vpop.eup %1538  ;;  %v1140_v42 = vsub.f32 %v2015_v59, %v1113_v39 }
 0x35a   : > { %v1541_v41 = vpop.eup %1540  ;;  %1155 = vst [vmem:[%s1738_s14 + $0x18] sm:$0xff] %v1139_v40  ;;  %v1127_v43 = vmul.f32 0.6931472, %v1539_v37 }
 0x35b   : > { %1156 = vst [vmem:[%s1738_s14 + $0x20] sm:$0xff] %v1140_v42  ;;  %v1129_v10 = vmul.f32 0.6931472, %v1541_v41  ;;  %v1103_v44 = vpop.xlane.xlu1 %1102 }
 0x35c   : > { %v1147_v49 = vsub.f32 %v2012_v56, %v1127_v43  ;;  %1552 = vlog2.f32 %v1103_v44 }
 0x35d   : > { %v1543_v53 = vpop.eup %1542  ;;  %v1148_v15 = vsub.f32 %v2025_v0, %v1129_v10 }
 0x35e   : > { %v1545_v57 = vpop.eup %1544  ;;  %1163 = vst [vmem:[%s1738_s14 + $0x58] sm:$0xff] %v1147_v49  ;;  %v1115_v54 = vmul.f32 0.6931472, %v1543_v53 }
 0x35f   : > { %1164 = vst [vmem:[%s1738_s14 + $0x60] sm:$0xff] %v1148_v15  ;;  %v1117_v59 = vmul.f32 0.6931472, %v1545_v57 }
 0x360   : > { %v1141_v52 = vsub.f32 %v2022_v5, %v1115_v54 }
 0x361   : > { %v1547_v50 = vpop.eup %1546  ;;  %v1142_v38 = vsub.f32 %v2035_v13, %v1117_v59 }
 0x362   : > { %v1549_v18 = vpop.eup %1548  ;;  %1157 = vst [vmem:[%s1738_s14 + $0x28] sm:$0xff] %v1141_v52  ;;  %v1131_v56 = vmul.f32 0.6931472, %v1547_v50 }
 0x363   : > { %1158 = vst [vmem:[%s1738_s14 + $0x30] sm:$0xff] %v1142_v38  ;;  %v1133_v55 = vmul.f32 0.6931472, %v1549_v18 }
 0x364   : > { %v1149_v0 = vsub.f32 %v2032_v12, %v1131_v56 }
 0x365   : > { %v1551_v61 = vpop.eup %1550  ;;  %v1150_v46 = vsub.f32 %v2047_v26, %v1133_v55 }
 0x366   : > { %1165 = vst [vmem:[%s1738_s14 + $0x68] sm:$0xff] %v1149_v0  ;;  %v1119_v51 = vmul.f32 0.6931472, %v1551_v61 }
 0x367   : > { %1166 = vst [vmem:[%s1738_s14 + $0x70] sm:$0xff] %v1150_v46 }
 0x368   : > { %v1143_v5 = vsub.f32 %v2044_v1, %v1119_v51 }
 0x369   : > { %v1553_v63 = vpop.eup %1552 }
 0x36a   : > { %1159 = vst [vmem:[%s1738_s14 + $0x38] sm:$0xff] %v1143_v5  ;;  %v1135_v3 = vmul.f32 0.6931472, %v1553_v63 }
 0x36c   : > { %v1151_v13 = vsub.f32 %v2056_v6, %v1135_v3 }
 0x36e   : > { %1167 = vst [vmem:[%s1738_s14 + $0x78] sm:$0xff] %v1151_v13 }
 0x36f PF: > { %s15_s24 = sadd.s32 1, %s1608_s24   ;;  %s2138_s18 = smov %s1588_s19 }
 0x370   : > { %p12_p0 = scmp.ge.s32.totalorder %s15_s24, 11   ;;  %s2139_s19 = smov %s1693_s6 }
 0x371   : > { %s2140_s20 = smov %s1600_s22  ;;  %s2141_s21 = smov %s1604_s23 }
 0x372   : > { %s2142_s22 = smov %s2145_s25  ;;  %s2143_s23 = smov %s2149_s26 }
 0x373   :  { %14 = sbr.rel (!%p12_p0) target bundleno = 4 (0x4), region = 130 }

// kernel: vgcn2_forward.2
= control target key start
LH: loop header
LB: loop body
LE: loop exit
PB: predicated region body
PF: predicated region fallthrough
CT: control target
= control target key end

     0   :  { %s1320_s15 = smov 0   ;;  %s1322_s16 = smov 0   ;;  %s1532_s0 = inlined_call_operand.vmem [shape: bf16[384,384], index: 0, kind: input, shape index: {}]   ;;  %s1533_s1 = inlined_call_operand.vmem [shape: bf16[384,16], index: 1, kind: input, shape index: {}]   ;;  %s1534_s2 = inlined_call_operand.vmem [shape: bf16[16,8], index: 2, kind: input, shape index: {}]   ;;  %s1535_s3 = inlined_call_operand.vmem [shape: f32[1,8], index: 3, kind: input, shape index: {}]   ;;  %s1536_s4 = inlined_call_operand.vmem [shape: bf16[384,8], index: 4, kind: output, shape index: {}]  }
   0x1   :  { %s1324_s17 = smov 0   ;;  %s1326_s18 = smov 0  }
   0x2   :  { %s1328_s19 = smov 0   ;;  %s1330_s20 = smov 0  }
   0x3   :  { %s1332_s21 = smov 0  }
   0x4 LB: > { %s23_s22 = sadd.s32 1, %s1284_s19  ;;  %s26_s23 = sadd.s32 1, %s1288_s20  ;;  %s1292_s21 = sphi %s1332_s21, %s14_s21   ;;  %s1288_s20 = sphi %s1330_s20, %s1542_s20   ;;  %s1284_s19 = sphi %s1328_s19, %s1541_s19   ;;  %s1280_s18 = sphi %s1326_s18, %s1540_s18   ;;  %s1276_s17 = sphi %s1324_s17, %s1539_s17   ;;  %s1272_s16 = sphi %s1322_s16, %s1538_s16   ;;  %s1268_s15 = sphi %s1320_s15, %s1537_s15  }
   0x5   : > { %p24_p0 = scmp.ge.s32.totalorder %s23_s22, 3  ;;  %p42_p1 = scmp.ne.s32.totalorder %s1272_s16, %s1268_s15 }
   0x6   : > { %p43_p2 = scmp.eq.s32.totalorder %s1292_s21, 0  ;;  %s35_s27 = sadd.s32 1, %s1272_s16 }
   0x7   : > { %s1544_s22 = smov (%p24_p0, %s23_s22), 0  ;;  %s1546_s23 = smov (!%p24_p0, %s26_s23), %s1288_s20 }
   0x8   : > { %p44_p3 = por %p43_p2, %p42_p1  ;;  %p28_p4 = scmp.ge.s32.totalorder %s1546_s23, 3 }
   0x9   : > { %s31_s24 = ssub.s32 %s1284_s19, %s1544_s22  ;;  %p999_p6 = scmp.ge.s32.totalorder %s1292_s21, 9 }
   0xa   : > { %s1548_s23 = smov (%p28_p4, %s1546_s23), 0 }
   0xb   : > { %s30_s25 = ssub.s32 %s1288_s20, %s1548_s23  ;;  %168 = sbr.rel (%p999_p6) target bundleno = 33 (0x21), region = 24 }
   0xc   : > { %s32_s26 = sor.u32 %s31_s24, %s30_s25 }
   0xd   : > { %p33_p5 = scmp.eq.s32.totalorder %s32_s26, 0 }
   0xf   : > { %s1371_s28 = scalar_select %p33_p5, %s1272_s16, %s35_s27  }
  0x10   : > { %171 = sbr.rel (!%p44_p3) target bundleno = 33 (0x21), region = 28  ;;  %s173_s29 = sand.u32 (%p44_p3), 1, %s1272_s16  }
  0x11   : > { %s1163_s30 = smul.u32 (%p44_p3), 48, %s1288_s20  ;;  %s1000_s5 = sshll.u32 (%p44_p3), %s173_s29, 6 }
  0x12   : > { %s175_s11 = scalar_lea.vmem (%p44_p3), [#allocation3], %s1000_s5 }
  0x13   : > { %s178_s6 = sadd.s32 (%p44_p3), %s1284_s19, %s1163_s30 }
  0x14   : > { %s1003_s7 = sshll.u32 (%p44_p3), %s178_s6, 2 }
  0x15   : > { %s1380_s10 = scalar_lea.vmem %s1532_s0, %s1003_s7 }
  0x16   : > { %v197_v0 = vld [vmem:[%s1380_s10] sm:$0xf]  ;;  %v199_v1 = vld [vmem:[%s1380_s10 + $0xc] sm:$0xf]  ;;  %v201_v2 = vld [vmem:[%s1380_s10 + $0x18] sm:$0xf] }
  0x17   : > { %198 = vst [vmem:[%s175_s11] sm:$0xf] %v197_v0  ;;  %200 = vst [vmem:[%s175_s11 + $0x4] sm:$0xf] %v199_v1  ;;  %v203_v3 = vld [vmem:[%s1380_s10 + $0x24] sm:$0xf] }
  0x18   : > { %202 = vst [vmem:[%s175_s11 + $0x8] sm:$0xf] %v201_v2  ;;  %v205_v4 = vld [vmem:[%s1380_s10 + $0x30] sm:$0xf]  ;;  %v207_v5 = vld [vmem:[%s1380_s10 + $0x3c] sm:$0xf] }
  0x19   : > { %204 = vst [vmem:[%s175_s11 + $0xc] sm:$0xf] %v203_v3  ;;  %206 = vst [vmem:[%s175_s11 + $0x10] sm:$0xf] %v205_v4  ;;  %v209_v6 = vld [vmem:[%s1380_s10 + $0x48] sm:$0xf] }
  0x1a   : > { %208 = vst [vmem:[%s175_s11 + $0x14] sm:$0xf] %v207_v5  ;;  %v211_v7 = vld [vmem:[%s1380_s10 + $0x54] sm:$0xf]  ;;  %v213_v8 = vld [vmem:[%s1380_s10 + $0x60] sm:$0xf] }
  0x1b   : > { %210 = vst [vmem:[%s175_s11 + $0x18] sm:$0xf] %v209_v6  ;;  %212 = vst [vmem:[%s175_s11 + $0x1c] sm:$0xf] %v211_v7  ;;  %v215_v9 = vld [vmem:[%s1380_s10 + $0x6c] sm:$0xf] }
  0x1c   : > { %214 = vst [vmem:[%s175_s11 + $0x20] sm:$0xf] %v213_v8  ;;  %v217_v10 = vld [vmem:[%s1380_s10 + $0x78] sm:$0xf]  ;;  %v219_v11 = vld [vmem:[%s1380_s10 + $0x84] sm:$0xf] }
  0x1d   : > { %216 = vst [vmem:[%s175_s11 + $0x24] sm:$0xf] %v215_v9  ;;  %218 = vst [vmem:[%s175_s11 + $0x28] sm:$0xf] %v217_v10  ;;  %v221_v12 = vld [vmem:[%s1380_s10 + $0x90] sm:$0xf] }
  0x1e   : > { %220 = vst [vmem:[%s175_s11 + $0x2c] sm:$0xf] %v219_v11  ;;  %v223_v13 = vld [vmem:[%s1380_s10 + $0x9c] sm:$0xf]  ;;  %v225_v14 = vld [vmem:[%s1380_s10 + $0xa8] sm:$0xf] }
  0x1f   : > { %222 = vst [vmem:[%s175_s11 + $0x30] sm:$0xf] %v221_v12  ;;  %224 = vst [vmem:[%s175_s11 + $0x34] sm:$0xf] %v223_v13  ;;  %v227_v15 = vld [vmem:[%s1380_s10 + $0xb4] sm:$0xf] }
  0x20   : > { %226 = vst [vmem:[%s175_s11 + $0x38] sm:$0xf] %v225_v14  ;;  %228 = vst [vmem:[%s175_s11 + $0x3c] sm:$0xf] %v227_v15 }
  0x21 PF: > { %p1004_p7 = scmp.ge.s32.totalorder %s1292_s21, 1  ;;  %p292_p8 = scmp.lt.s32.totalorder %s1292_s21, 10 }
  0x23   : > { %p293_p9 = pnand %p1004_p7, %p292_p8 }
  0x24   : > { %s299_s12 = sand.u32 (!%p293_p9), 1, %s1268_s15   ;;  %s1006_s13 = sshll.u32 (!%p293_p9), %s1276_s17, 4 }
  0x25   : > { %296 = sbr.rel (%p293_p9) target bundleno = 555 (0x22b), region = 73  ;;  %s1005_s14 = sshll.u32 (!%p293_p9), %s299_s12, 6 }
  0x26   : > { %p331_p10 = scmp.lt.s32.totalorder (!%p293_p9), %s1006_s13, 47  ;;  %s1008_s24 = sshll.u32 (!%p293_p9), %s1280_s18, 4 }
  0x27   : > { %p337_p11 = scmp.lt.s32.totalorder (!%p293_p9), %s1008_s24, 47  ;;  %s1413_s15 = scalar_lea.vmem (!%p293_p9), [#allocation3], %s1005_s14 }
  0x28   : > { %p1010_p12 = scmp.ne.s32.totalorder (!%p293_p9), %s1276_s17, 0 }
  0x2a   : > { %s1550_s13 = smov (!%p331_p10, %s1006_s13), 47  ;;  %s1552_s24 = smov (!%p337_p11, %s1008_s24), 47 }
  0x2b   : > { %s1007_s25 = sshll.u32 %s1550_s13, 2  ;;  %s1009_s30 = sshll.u32 %s1552_s24, 2 }
  0x2c   : > { %s1406_s29 = scalar_lea.vmem %s1533_s1, %s1007_s25  ;;  %s1411_s7 = scalar_lea.vmem %s1536_s4, %s1009_s30 }
  0x2d   : > { %346 = sbr.rel (%p1010_p12) target bundleno = 59 (0x3b), region = 81 }
  0x32   : > { %vm347_vm0 = vcmask 64512   ;;  %v1294_v16 = vmov 0.0  }
  0x33   : > { %348 = vst.msk [vmem:[#allocation2] sm:$0xff] %vm347_vm0, %v1294_v16  ;;  %349 = vst.msk [vmem:[#allocation2 + $0x8] sm:$0xff] %vm347_vm0, %v1294_v16 }
  0x34   : > { %350 = vst.msk [vmem:[#allocation2 + $0x10] sm:$0xff] %vm347_vm0, %v1294_v16  ;;  %351 = vst.msk [vmem:[#allocation2 + $0x18] sm:$0xff] %vm347_vm0, %v1294_v16 }
  0x35   : > { %352 = vst.msk [vmem:[#allocation2 + $0x20] sm:$0xff] %vm347_vm0, %v1294_v16  ;;  %353 = vst.msk [vmem:[#allocation2 + $0x28] sm:$0xff] %vm347_vm0, %v1294_v16 }
  0x36   : > { %354 = vst.msk [vmem:[#allocation2 + $0x30] sm:$0xff] %vm347_vm0, %v1294_v16  ;;  %355 = vst.msk [vmem:[#allocation2 + $0x38] sm:$0xff] %vm347_vm0, %v1294_v16 }
  0x37   : > { %356 = vst.msk [vmem:[#allocation2 + $0x40] sm:$0xff] %vm347_vm0, %v1294_v16  ;;  %357 = vst.msk [vmem:[#allocation2 + $0x48] sm:$0xff] %vm347_vm0, %v1294_v16 }
  0x38   : > { %358 = vst.msk [vmem:[#allocation2 + $0x50] sm:$0xff] %vm347_vm0, %v1294_v16  ;;  %359 = vst.msk [vmem:[#allocation2 + $0x58] sm:$0xff] %vm347_vm0, %v1294_v16 }
  0x39   : > { %360 = vst.msk [vmem:[#allocation2 + $0x60] sm:$0xff] %vm347_vm0, %v1294_v16  ;;  %361 = vst.msk [vmem:[#allocation2 + $0x68] sm:$0xff] %vm347_vm0, %v1294_v16 }
  0x3a   : > { %362 = vst.msk [vmem:[#allocation2 + $0x70] sm:$0xff] %vm347_vm0, %v1294_v16  ;;  %363 = vst.msk [vmem:[#allocation2 + $0x78] sm:$0xff] %vm347_vm0, %v1294_v16 }
  0x3b PF: > { %v1221_v17 = vld [vmem:[%s1534_s2] sm:$0xff]   ;;  %vm428_vm1 = vcmask 130048   ;;  %v1223_v19 = vld [vmem:[%s1406_s29 + $0x8] sm:$0xff]   ;;  %v1224_v20 = vld [vmem:[%s1406_s29 + $0x10] sm:$0xff]   ;;  %vm751_vm2 = vcmask 64512   ;;  %p1036_p13 = scmp.ne.s32.totalorder %s1276_s17, 2 }
  0x3c   : > { %v1222_v18 = vld [vmem:[%s1406_s29] sm:$0xff]   ;;  %1097 = vmatprep.subr.bf16.mxu0 %v1221_v17  ;;  %v1225_v21 = vld [vmem:[%s1406_s29 + $0x18] sm:$0xff]   ;;  %v1227_v23 = vld [vmem:[%s1406_s29 + $0x28] sm:$0xff]  }
  0x3d   : > { %1098 = vmatpush3.bf16.msra.mxu0 %v1221_v17  ;;  %1099 = vmatprep.mubr.msk.bf16.mxu0 %vm428_vm1, %v1222_v18  ;;  %v1226_v22 = vld [vmem:[%s1406_s29 + $0x20] sm:$0xff]   ;;  %v1228_v24 = vld [vmem:[%s1406_s29 + $0x30] sm:$0xff]   ;;  %v1229_v25 = vld [vmem:[%s1406_s29 + $0x38] sm:$0xff]  }
  0x3e   : > { %v1230_v26 = vld [vmem:[%s1413_s15 + $0x10] sm:$0xff]   ;;  %v1234_v27 = vld [vmem:[%s1413_s15] sm:$0xff]   ;;  %v1231_v52 = vld [vmem:[%s1413_s15 + $0x18] sm:$0xff]  }
  0x3f   : > { %1135 = vmatprep.mubr.bf16.mxu1 %v1230_v26  ;;  %v1235_v53 = vld [vmem:[%s1413_s15 + $0x8] sm:$0xff]   ;;  %v1232_v54 = vld [vmem:[%s1413_s15 + $0x20] sm:$0xff]   ;;  %v1236_v56 = vld [vmem:[%s1413_s15 + $0x30] sm:$0xff]  }
  0x40   : > { %1100 = vmatmul.mubr.msk.bf16.vlgmr.msra.gmra.mxu0 %vm428_vm1, %v1223_v19  ;;  %v1233_v55 = vld [vmem:[%s1413_s15 + $0x28] sm:$0xff]   ;;  %v1237_v57 = vld [vmem:[%s1413_s15 + $0x38] sm:$0xff]   ;;  %v556_v58 = vld [vmem:[#allocation2 + $0x30] sm:$0xff] }
  0x41   : > { %1103 = vmatprep.mubr.msk.bf16.mxu0 %vm428_vm1, %v1224_v20  ;;  %v552_v59 = vld [vmem:[#allocation2 + $0x10] sm:$0xff]  ;;  %v554_v61 = vld [vmem:[#allocation2 + $0x20] sm:$0xff]  ;;  %v557_v3 = vld [vmem:[#allocation2 + $0x38] sm:$0xff] }
  0x42   : > { %v550_v63 = vld [vmem:[#allocation2] sm:$0xff]  ;;  %v553_v5 = vld [vmem:[#allocation2 + $0x18] sm:$0xff]  ;;  %v555_v9 = vld [vmem:[#allocation2 + $0x28] sm:$0xff] }
  0x43   : > { %v551_v11 = vld [vmem:[#allocation2 + $0x8] sm:$0xff]  ;;  %v560_v15 = vld [vmem:[#allocation2 + $0x50] sm:$0xff]  ;;  %v558_v20 = vld [vmem:[#allocation2 + $0x40] sm:$0xff] }
  0x44   : > { %v559_v26 = vld [vmem:[#allocation2 + $0x48] sm:$0xff] }
  0x48   : > { %1104 = vmatmul.mubr.msk.bf16.gmra.mxu0 %vm428_vm1, %v1225_v21 }
  0x49   : > { %1107 = vmatprep.mubr.msk.bf16.mxu0 %vm428_vm1, %v1226_v22 }
  0x50   : > { %1108 = vmatmul.mubr.msk.bf16.gmra.mxu0 %vm428_vm1, %v1227_v23  ;;  %v561_v23 = vld [vmem:[#allocation2 + $0x58] sm:$0xff] }
  0x51   : > { %1111 = vmatprep.mubr.msk.bf16.mxu0 %vm428_vm1, %v1228_v24 }
  0x58   : > { %1112 = vmatmul.mubr.msk.bf16.gmra.mxu0 %vm428_vm1, %v1229_v25 }
  0x59   : > { %1131 = vmatprep.mubr.bf16.mxu0 %v1234_v27 }
 0x100   : > { %v1101_v28 = vpop.f32.mrf.mxu0 }
 0x102   : > { %v487_v29 = vpop.f32.mrf.mxu0 }
 0x104   : > { %v1102_v30 = vpop.f32.mrf.mxu0 }
 0x105   : > { %v583_v50 = vpack.c.bf16 %v1102_v30, %v1101_v28 }
 0x106   : > { %v490_v31 = vpop.f32.mrf.mxu0 }
 0x107   : > { %v582_v51 = vpack.c.bf16 %v490_v31, %v487_v29  ;;  %v564_v29 = vld [vmem:[#allocation2 + $0x70] sm:$0xff] }
 0x108   : > { %v1105_v32 = vpop.f32.mrf.mxu0 }
 0x10a   : > { %v503_v33 = vpop.f32.mrf.mxu0 }
 0x10c   : > { %v1106_v34 = vpop.f32.mrf.mxu0 }
 0x10d   : > { %v585_v48 = vpack.c.bf16 %v1106_v34, %v1105_v32  ;;  %v562_v32 = vld [vmem:[#allocation2 + $0x60] sm:$0xff] }
 0x10e   : > { %v506_v35 = vpop.f32.mrf.mxu0 }
 0x10f   : > { %v584_v49 = vpack.c.bf16 %v506_v35, %v503_v33  ;;  %v565_v35 = vld [vmem:[#allocation2 + $0x78] sm:$0xff] }
 0x110   : > { %v1109_v36 = vpop.f32.mrf.mxu0 }
 0x112   : > { %v519_v37 = vpop.f32.mrf.mxu0 }
 0x114   : > { %v1110_v38 = vpop.f32.mrf.mxu0 }
 0x115   : > { %v587_v46 = vpack.c.bf16 %v1110_v38, %v1109_v36  ;;  %v563_v38 = vld [vmem:[#allocation2 + $0x68] sm:$0xff] }
 0x116   : > { %v522_v39 = vpop.f32.mrf.mxu0 }
 0x117   : > { %v586_v47 = vpack.c.bf16 %v522_v39, %v519_v37 }
 0x118   : > { %v1113_v40 = vpop.f32.mrf.mxu0 }
 0x11a   : > { %v535_v41 = vpop.f32.mrf.mxu0 }
 0x11c   : > { %v1114_v42 = vpop.f32.mrf.mxu0 }
 0x11d   : > { %v589_v43 = vpack.c.bf16 %v1114_v42, %v1113_v40 }
 0x11e   : > { %v538_v44 = vpop.f32.mrf.mxu0 }
 0x11f   : > { %v588_v45 = vpack.c.bf16 %v538_v44, %v535_v41  ;;  %1115 = vmatprep.subr.bf16.mxu0 %v589_v43  ;;  %1147 = vmatprep.subr.bf16.mxu1 %v589_v43 }
 0x120   : > { %1116 = vmatpush3.bf16.msra.mxu0 %v589_v43  ;;  %1155 = vmatpush3.bf16.msra.mxu1 %v589_v43 }
 0x121   : > { %1117 = vmatprep.subr.bf16.mxu0 %v588_v45  ;;  %1148 = vmatprep.subr.bf16.mxu1 %v588_v45 }
 0x124   : > { %1118 = vmatpush3.bf16.msra.mxu0 %v588_v45  ;;  %1156 = vmatpush3.bf16.msra.mxu1 %v588_v45 }
 0x125   : > { %1119 = vmatprep.subr.bf16.mxu0 %v587_v46  ;;  %1149 = vmatprep.subr.bf16.mxu1 %v587_v46 }
 0x128   : > { %1120 = vmatpush3.bf16.msra.mxu0 %v587_v46  ;;  %1157 = vmatpush3.bf16.msra.mxu1 %v587_v46 }
 0x129   : > { %1121 = vmatprep.subr.bf16.mxu0 %v586_v47  ;;  %1150 = vmatprep.subr.bf16.mxu1 %v586_v47 }
 0x12c   : > { %1122 = vmatpush3.bf16.msra.mxu0 %v586_v47  ;;  %1158 = vmatpush3.bf16.msra.mxu1 %v586_v47 }
 0x12d   : > { %1123 = vmatprep.subr.bf16.mxu0 %v585_v48  ;;  %1151 = vmatprep.subr.bf16.mxu1 %v585_v48 }
 0x130   : > { %1124 = vmatpush3.bf16.msra.mxu0 %v585_v48  ;;  %1159 = vmatpush3.bf16.msra.mxu1 %v585_v48 }
 0x131   : > { %1125 = vmatprep.subr.bf16.mxu0 %v584_v49  ;;  %1152 = vmatprep.subr.bf16.mxu1 %v584_v49 }
 0x134   : > { %1126 = vmatpush3.bf16.msra.mxu0 %v584_v49  ;;  %1160 = vmatpush3.bf16.msra.mxu1 %v584_v49 }
 0x135   : > { %1127 = vmatprep.subr.bf16.mxu0 %v583_v50  ;;  %1153 = vmatprep.subr.bf16.mxu1 %v583_v50 }
 0x138   : > { %1128 = vmatpush3.bf16.msra.mxu0 %v583_v50  ;;  %1161 = vmatpush3.bf16.msra.mxu1 %v583_v50 }
 0x139   : > { %1129 = vmatprep.subr.bf16.mxu0 %v582_v51  ;;  %1154 = vmatprep.subr.bf16.mxu1 %v582_v51 }
 0x13c   : > { %1130 = vmatpush3.bf16.msra.mxu0 %v582_v51  ;;  %1162 = vmatpush3.bf16.msra.mxu1 %v582_v51 }
 0x13f   : > { %1136 = vmatmul.mubr.bf16.vlgmr.msra.gmra.mxu1 %v1231_v52  ;;  %1132 = vmatmul.mubr.bf16.vlgmr.msra.gmra.mxu0 %v1235_v53 }
 0x140   : > { %1139 = vmatprep.mubr.bf16.mxu1 %v1232_v54 }
 0x147   : > { %1140 = vmatmul.mubr.bf16.gmra.mxu1 %v1233_v55 }
 0x148   : > { %1143 = vmatprep.mubr.bf16.mxu1 %v1236_v56 }
 0x14f   : > { %1144 = vmatmul.mubr.bf16.gmra.mxu1 %v1237_v57 }
 0x1ff   : > { %v1137_v60 = vpop.f32.mrf.mxu1  ;;  %v1133_v62 = vpop.f32.mrf.mxu0 }
 0x200   : > { %v741_v0 = vadd.f32 %v1137_v60, %v556_v58  ;;  %v737_v1 = vadd.f32 %v1133_v62, %v552_v59 }
 0x201   : > { %v688_v2 = vpop.f32.mrf.mxu1  ;;  %v672_v4 = vpop.f32.mrf.mxu0 }
 0x202   : > { %758 = vst.msk [vmem:[#allocation2 + $0x30] sm:$0xff] %vm751_vm2, %v741_v0  ;;  %v739_v6 = vadd.f32 %v688_v2, %v554_v61  ;;  %754 = vst.msk [vmem:[#allocation2 + $0x10] sm:$0xff] %vm751_vm2, %v737_v1  ;;  %v735_v7 = vadd.f32 %v672_v4, %v550_v63 }
 0x203   : > { %v1138_v8 = vpop.f32.mrf.mxu1  ;;  %v1134_v10 = vpop.f32.mrf.mxu0 }
 0x204   : > { %756 = vst.msk [vmem:[#allocation2 + $0x20] sm:$0xff] %vm751_vm2, %v739_v6  ;;  %v742_v12 = vadd.f32 %v1138_v8, %v557_v3  ;;  %752 = vst.msk [vmem:[#allocation2] sm:$0xff] %vm751_vm2, %v735_v7  ;;  %v738_v13 = vadd.f32 %v1134_v10, %v553_v5 }
 0x205   : > { %v691_v14 = vpop.f32.mrf.mxu1  ;;  %v675_v16 = vpop.f32.mrf.mxu0 }
 0x206   : > { %759 = vst.msk [vmem:[#allocation2 + $0x38] sm:$0xff] %vm751_vm2, %v742_v12  ;;  %v740_v17 = vadd.f32 %v691_v14, %v555_v9  ;;  %755 = vst.msk [vmem:[#allocation2 + $0x18] sm:$0xff] %vm751_vm2, %v738_v13  ;;  %v736_v18 = vadd.f32 %v675_v16, %v551_v11 }
 0x207   : > { %v1141_v19 = vpop.f32.mrf.mxu1 }
 0x208   : > { %757 = vst.msk [vmem:[#allocation2 + $0x28] sm:$0xff] %vm751_vm2, %v740_v17  ;;  %v745_v21 = vadd.f32 %v1141_v19, %v560_v15  ;;  %753 = vst.msk [vmem:[#allocation2 + $0x8] sm:$0xff] %vm751_vm2, %v736_v18 }
 0x209   : > { %v704_v22 = vpop.f32.mrf.mxu1 }
 0x20a   : > { %762 = vst.msk [vmem:[#allocation2 + $0x50] sm:$0xff] %vm751_vm2, %v745_v21  ;;  %v743_v24 = vadd.f32 %v704_v22, %v558_v20 }
 0x20b   : > { %v1142_v25 = vpop.f32.mrf.mxu1 }
 0x20c   : > { %760 = vst.msk [vmem:[#allocation2 + $0x40] sm:$0xff] %vm751_vm2, %v743_v24  ;;  %v746_v27 = vadd.f32 %v1142_v25, %v561_v23 }
 0x20d   : > { %v707_v28 = vpop.f32.mrf.mxu1 }
 0x20e   : > { %763 = vst.msk [vmem:[#allocation2 + $0x58] sm:$0xff] %vm751_vm2, %v746_v27  ;;  %v744_v30 = vadd.f32 %v707_v28, %v559_v26 }
 0x20f   : > { %v1145_v31 = vpop.f32.mrf.mxu1 }
 0x210   : > { %761 = vst.msk [vmem:[#allocation2 + $0x48] sm:$0xff] %vm751_vm2, %v744_v30  ;;  %v749_v33 = vadd.f32 %v1145_v31, %v564_v29 }
 0x211   : > { %v720_v34 = vpop.f32.mrf.mxu1 }
 0x212   : > { %766 = vst.msk [vmem:[#allocation2 + $0x70] sm:$0xff] %vm751_vm2, %v749_v33  ;;  %v747_v36 = vadd.f32 %v720_v34, %v562_v32 }
 0x213   : > { %v1146_v37 = vpop.f32.mrf.mxu1 }
 0x214   : > { %764 = vst.msk [vmem:[#allocation2 + $0x60] sm:$0xff] %vm751_vm2, %v747_v36  ;;  %v750_v39 = vadd.f32 %v1146_v37, %v565_v35  ;;  %771 = sbr.rel (%p1036_p13) target bundleno = 555 (0x22b), region = 85 }
 0x215   : > { %v723_v40 = vpop.f32.mrf.mxu1 }
 0x216   : > { %767 = vst.msk [vmem:[#allocation2 + $0x78] sm:$0xff] %vm751_vm2, %v750_v39  ;;  %v748_v41 = vadd.f32 %v723_v40, %v563_v38 }
 0x218   : > { %765 = vst.msk [vmem:[#allocation2 + $0x68] sm:$0xff] %vm751_vm2, %v748_v41 }
 0x219   : > { %v772_v42 = vld [vmem:[#allocation2] sm:$0xff]  ;;  %v773_v44 = vld [vmem:[#allocation2 + $0x8] sm:$0xff]  ;;  %v774_v47 = vld [vmem:[#allocation2 + $0x10] sm:$0xff]  ;;  %vm891_vm3 = vcmask 60416  }
 0x21a   : > { %v1037_v43 = vld [vmem:[%s1535_s3] ss:$0 sm:$0xff]  ;;  %v775_v48 = vld [vmem:[#allocation2 + $0x18] sm:$0xff]  ;;  %v777_v53 = vld [vmem:[#allocation2 + $0x28] sm:$0xff] }
 0x21b   : > { %v795_v45 = vadd.f32 %v1037_v43, %v772_v42  ;;  %v796_v46 = vadd.f32 %v1037_v43, %v773_v44  ;;  %v776_v49 = vld [vmem:[#allocation2 + $0x20] sm:$0xff]  ;;  %v797_v50 = vadd.f32 %v1037_v43, %v774_v47  ;;  %v798_v51 = vadd.f32 %v1037_v43, %v775_v48  ;;  %v778_v54 = vld [vmem:[#allocation2 + $0x30] sm:$0xff]  ;;  %v779_v55 = vld [vmem:[#allocation2 + $0x38] sm:$0xff] }
 0x21c   : > { %v799_v52 = vadd.f32 %v1037_v43, %v776_v49  ;;  %v800_v58 = vadd.f32 %v1037_v43, %v777_v53  ;;  %v801_v59 = vadd.f32 %v1037_v43, %v778_v54  ;;  %v802_v63 = vadd.f32 %v1037_v43, %v779_v55  ;;  %v780_v0 = vld [vmem:[#allocation2 + $0x40] sm:$0xff]  ;;  %v781_v1 = vld [vmem:[#allocation2 + $0x48] sm:$0xff]  ;;  %v782_v6 = vld [vmem:[#allocation2 + $0x50] sm:$0xff] }
 0x21d   : > { %v811_v56 = vmax.f32 %v795_v45, 0.0  ;;  %v812_v57 = vmax.f32 %v796_v46, 0.0  ;;  %v813_v60 = vmax.f32 %v797_v50, 0.0  ;;  %v814_v61 = vmax.f32 %v798_v51, 0.0  ;;  %v783_v7 = vld [vmem:[#allocation2 + $0x58] sm:$0xff]  ;;  %v784_v8 = vld [vmem:[#allocation2 + $0x60] sm:$0xff] }
 0x21e   : > { %v815_v62 = vmax.f32 %v799_v52, 0.0  ;;  %v816_v4 = vmax.f32 %v800_v58, 0.0  ;;  %v817_v5 = vmax.f32 %v801_v59, 0.0  ;;  %v818_v12 = vmax.f32 %v802_v63, 0.0  ;;  %v786_v14 = vld [vmem:[#allocation2 + $0x70] sm:$0xff]  ;;  %v787_v19 = vld [vmem:[#allocation2 + $0x78] sm:$0xff] }
 0x21f   : > { %v1056_v2 = vpack.c.bf16 %v811_v56, %v811_v56  ;;  %v1057_v3 = vpack.c.bf16 %v812_v57, %v812_v57  ;;  %v1058_v9 = vpack.c.bf16 %v813_v60, %v813_v60  ;;  %v1059_v10 = vpack.c.bf16 %v814_v61, %v814_v61  ;;  %v785_v13 = vld [vmem:[#allocation2 + $0x68] sm:$0xff] }
 0x220   : > { %v1060_v11 = vpack.c.bf16 %v815_v62, %v815_v62  ;;  %v1061_v15 = vpack.c.bf16 %v816_v4, %v816_v4  ;;  %v1062_v16 = vpack.c.bf16 %v817_v5, %v817_v5  ;;  %v803_v17 = vadd.f32 %v1037_v43, %v780_v0 }
 0x221   : > { %892 = vst.msk [vmem:[%s1411_s7] sm:$0xf] %vm891_vm3, %v1056_v2  ;;  %893 = vst.msk [vmem:[%s1411_s7 + $0x4] sm:$0xf] %vm891_vm3, %v1057_v3  ;;  %v804_v18 = vadd.f32 %v1037_v43, %v781_v1  ;;  %v1063_v20 = vpack.c.bf16 %v818_v12, %v818_v12  ;;  %v805_v21 = vadd.f32 %v1037_v43, %v782_v6 }
 0x222   : > { %894 = vst.msk [vmem:[%s1411_s7 + $0x8] sm:$0xf] %vm891_vm3, %v1058_v9  ;;  %895 = vst.msk [vmem:[%s1411_s7 + $0xc] sm:$0xf] %vm891_vm3, %v1059_v10  ;;  %v806_v22 = vadd.f32 %v1037_v43, %v783_v7  ;;  %v807_v23 = vadd.f32 %v1037_v43, %v784_v8  ;;  %v819_v24 = vmax.f32 %v803_v17, 0.0  ;;  %v808_v26 = vadd.f32 %v1037_v43, %v785_v13 }
 0x223   : > { %896 = vst.msk [vmem:[%s1411_s7 + $0x10] sm:$0xf] %vm891_vm3, %v1060_v11  ;;  %897 = vst.msk [vmem:[%s1411_s7 + $0x14] sm:$0xf] %vm891_vm3, %v1061_v15  ;;  %v820_v25 = vmax.f32 %v804_v18, 0.0  ;;  %v809_v27 = vadd.f32 %v1037_v43, %v786_v14  ;;  %v821_v28 = vmax.f32 %v805_v21, 0.0  ;;  %v810_v31 = vadd.f32 %v1037_v43, %v787_v19 }
 0x224   : > { %898 = vst.msk [vmem:[%s1411_s7 + $0x18] sm:$0xf] %vm891_vm3, %v1062_v16  ;;  %899 = vst.msk [vmem:[%s1411_s7 + $0x1c] sm:$0xf] %vm891_vm3, %v1063_v20  ;;  %v822_v29 = vmax.f32 %v806_v22, 0.0  ;;  %v823_v30 = vmax.f32 %v807_v23, 0.0  ;;  %v1064_v32 = vpack.c.bf16 %v819_v24, %v819_v24 }
 0x225   : > { %v1065_v33 = vpack.c.bf16 %v820_v25, %v820_v25  ;;  %v824_v34 = vmax.f32 %v808_v26, 0.0  ;;  %v825_v35 = vmax.f32 %v809_v27, 0.0  ;;  %v1066_v36 = vpack.c.bf16 %v821_v28, %v821_v28 }
 0x226   : > { %v1067_v37 = vpack.c.bf16 %v822_v29, %v822_v29  ;;  %v1068_v38 = vpack.c.bf16 %v823_v30, %v823_v30  ;;  %v826_v39 = vmax.f32 %v810_v31, 0.0  ;;  %900 = vst.msk [vmem:[%s1411_s7 + $0x20] sm:$0xf] %vm891_vm3, %v1064_v32 }
 0x227   : > { %901 = vst.msk [vmem:[%s1411_s7 + $0x24] sm:$0xf] %vm891_vm3, %v1065_v33  ;;  %v1069_v40 = vpack.c.bf16 %v824_v34, %v824_v34  ;;  %v1070_v41 = vpack.c.bf16 %v825_v35, %v825_v35  ;;  %902 = vst.msk [vmem:[%s1411_s7 + $0x28] sm:$0xf] %vm891_vm3, %v1066_v36 }
 0x228   : > { %903 = vst.msk [vmem:[%s1411_s7 + $0x2c] sm:$0xf] %vm891_vm3, %v1067_v37  ;;  %904 = vst.msk [vmem:[%s1411_s7 + $0x30] sm:$0xf] %vm891_vm3, %v1068_v38  ;;  %v1071_v42 = vpack.c.bf16 %v826_v39, %v826_v39 }
 0x229   : > { %905 = vst.msk [vmem:[%s1411_s7 + $0x34] sm:$0xf] %vm891_vm3, %v1069_v40  ;;  %906 = vst.msk [vmem:[%s1411_s7 + $0x38] sm:$0xf] %vm891_vm3, %v1070_v41 }
 0x22a   : > { %907 = vst.msk [vmem:[%s1411_s7 + $0x3c] sm:$0xf] %vm891_vm3, %v1071_v42 }
 0x22b PF: > { %s14_s21 = sadd.s32 1, %s1292_s21   ;;  %s1537_s15 = smov %s1272_s16 }
 0x22c   : > { %p11_p0 = scmp.ge.s32.totalorder %s14_s21, 11   ;;  %s1538_s16 = smov %s1371_s28 }
 0x22d   : > { %s1539_s17 = smov %s1284_s19  ;;  %s1540_s18 = smov %s1288_s20 }
 0x22e   : > { %s1541_s19 = smov %s1544_s22  ;;  %s1542_s20 = smov %s1548_s23 }
 0x22f   :  { %13 = sbr.rel (!%p11_p0) target bundleno = 4 (0x4), region = 123 }

</bundles_post_ra>
